<compile_context>
chip_gen: v6e
topology: v6e:2x2x1
jax: 0.10.0
libtpu: 0.0.40
codegen_flags: <defaults>
</compile_context>

<pallas_src>
import functools

import jax
import jax.numpy as jnp
from jax import lax
from jax.experimental import pallas as pl
from jax.experimental.pallas import tpu as pltpu

# ----------------------------- configuration --------------------------------
B = 2                          # real batch
BPAD = 8                       # batch rows padded to one sublane tile
BITBOARD_SHAPE = (4, 16)       # -> bit_board_size = 64
VB_C, VB_H, VB_W = 4, 16, 16   # virtual_board (C, H, W)

BB_HIDDEN, BB_OUT = 32, 32
CNN_OUT_CH, CONV_K = 8, 3
POOL_K, POOL_S = 2, 2
CNN_OUT = 32
VAL_H1, VAL_H2 = 32, 32
POL_H1, POL_H2 = 64, 64
LATENT_PI = 4 * 8              # 32
LATENT_VF = 1

BB_SIZE = BITBOARD_SHAPE[0] * BITBOARD_SHAPE[1]        # 64
CONV_H = VB_H - CONV_K + 1                             # 14
CONV_W = VB_W - CONV_K + 1                             # 14
POOL_H = (CONV_H - POOL_K) // POOL_S + 1               # 7
POOL_W = (CONV_W - POOL_K) // POOL_S + 1               # 7
N_POOL = POOL_H * POOL_W                               # 49
N_FLAT = N_POOL * CNN_OUT_CH                           # 392 (torch n_flatten)
INPUT_DIM = BB_OUT + CNN_OUT                           # 64
PATCH_DIM = CONV_K * CONV_K * VB_C                     # 36
BLK_K = POOL_W * PATCH_DIM                             # 252 (block-diag conv K)
BLK_N = POOL_W * CNN_OUT_CH                            # 56  (block-diag conv N)
N_MEMBERS = POOL_K * POOL_K                            # 4 pool-window members
PATCH_ROWS = N_MEMBERS * POOL_H * BPAD                 # 224

PACK_COLS = 128                # packed parameter slab lane width
OUT_COLS = 128                 # packed output lane width


# --------------------- packed-parameter slab layout --------------------------
def _round8(n):
  return (n + 7) // 8 * 8


_PARAM_SHAPES = (
    ('w_bb1', (BB_SIZE, BB_HIDDEN)),
    ('b_bb1', (1, BB_HIDDEN)),
    ('w_bb2', (BB_HIDDEN, BB_OUT)),
    ('b_bb2', (1, BB_OUT)),
    ('w_conv_blk', (BLK_K, BLK_N)),        # block-diagonal im2col conv weight
    ('b_conv', (1, BLK_N)),                # conv bias tiled over pool columns
    ('w_cnn_lin', (N_FLAT, CNN_OUT)),
    ('b_cnn_lin', (1, CNN_OUT)),
    ('wv1_bb', (BB_OUT, VAL_H1)),          # K-split of value layer 1
    ('wv1_cnn', (CNN_OUT, VAL_H1)),
    ('bv1', (1, VAL_H1)),
    ('wv2', (VAL_H1, VAL_H2)),
    ('bv2', (1, VAL_H2)),
    ('wv3', (VAL_H2, 32)),                 # real width LATENT_VF=1, zero-padded to 32 lanes
    ('bv3', (1, 32)),
    ('wp1_bb', (BB_OUT, POL_H1)),          # K-split of policy layer 1
    ('wp1_cnn', (CNN_OUT, POL_H1)),
    ('bp1', (1, POL_H1)),
    ('wp2', (POL_H1, POL_H2)),
    ('bp2', (1, POL_H2)),
    ('wp3', (POL_H2, LATENT_PI)),
    ('bp3', (1, LATENT_PI)),
)

_PARAM_LAYOUT = {}
_off = 0
for _name, (_r, _c) in _PARAM_SHAPES:
  _PARAM_LAYOUT[_name] = (_off, _r, _c)   # every block starts 8-row aligned
  _off += _round8(_r)
PACK_ROWS = _off                           # 1144 rows -> ~572 KiB, one DMA


def _pv(params_ref, name):
  """Static (zero-cost) view of one tensor inside the packed parameter slab."""
  off, rows, cols = _PARAM_LAYOUT[name]
  return params_ref[off:off + rows, 0:cols]


# ------------------------------ Pallas kernel -------------------------------
def mlp_extractor_kernel(bb_ref, patches_ref, mask_ref, params_ref, out_ref):
  f32 = jnp.float32
  dot = functools.partial(jnp.dot, preferred_element_type=f32)
  relu = lambda x: jnp.maximum(x, 0.0)
  P = functools.partial(_pv, params_ref)

  # --- bit_board_network: Linear -> relu -> Linear -> relu
  bb = bb_ref[...]                                               # (8, 64)
  h = relu(dot(bb, P('w_bb1')) + P('b_bb1'))
  bb_emb = relu(dot(h, P('w_bb2')) + P('b_bb2'))                 # (8, 32)

  # --- cnn_network: Conv2d -> relu -> MaxPool -> relu, as ONE block-diag matmul.
  # patches: rows = member*56 + pool_row*8 + batch, lanes = pool_col*36 + patch_k
  conv_all = dot(patches_ref[...], P('w_conv_blk'))              # (224, 56)
  rows = POOL_H * BPAD                                           # 56 (8-aligned slabs)
  s = conv_all[0:rows]
  for m in range(1, N_MEMBERS):
    s = jnp.maximum(s, conv_all[m * rows:(m + 1) * rows])
  # bias + relu hoisted out of the max (monotone); relu∘relu folded to one relu.
  pooled = relu(s + P('b_conv'))                                 # (56, 56)

  # --- cnn_linear: 7 aligned (8,56)@(56,32) K-partial dots (was 49 tiny dots)
  wcl = P('w_cnn_lin')                                           # (392, 32)
  acc = dot(pooled[0:BPAD, :], wcl[0:BLK_N, :])
  for pi in range(1, POOL_H):
    acc = acc + dot(pooled[pi * BPAD:(pi + 1) * BPAD, :],
                    wcl[pi * BLK_N:(pi + 1) * BLK_N, :])
  cnn_emb = relu(acc + P('b_cnn_lin'))                           # (8, 32)

  # --- value_network: Linear -> tanh -> Linear -> tanh -> Linear
  # (first layer split over K so no lane-concat sits on the MXU path)
  v = jnp.tanh(dot(bb_emb, P('wv1_bb')) + dot(cnn_emb, P('wv1_cnn')) + P('bv1'))
  v = jnp.tanh(dot(v, P('wv2')) + P('bv2'))
  val = dot(v, P('wv3')) + P('bv3')                              # (8, 32), value in lane 0

  # --- output (policy) network: Linear -> relu -> Linear -> relu -> Linear
  pz = relu(dot(bb_emb, P('wp1_bb')) + dot(cnn_emb, P('wp1_cnn')) + P('bp1'))
  pz = relu(dot(pz, P('wp2')) + P('bp2'))
  logits = dot(pz, P('wp3')) + P('bp3')                          # (8, 32)

  # --- mask_log_softmax (finite large-negative instead of log(subnormal) -> -inf)
  vec = jnp.where(mask_ref[...] > 0.0, logits, -1e30)
  vmax = jnp.max(vec, axis=-1, keepdims=True)
  lse = vmax + jnp.log(jnp.sum(jnp.exp(vec - vmax), axis=-1, keepdims=True))
  logp = vec - lse

  # --- single lane-dense packed store: [bb_emb | cnn_emb | logp | value(+pad)]
  out_ref[...] = jnp.concatenate([bb_emb, cnn_emb, logp, val], axis=-1)  # (8, 128)


# ------------------------------- host-side glue ------------------------------
def _build_conv_patches(vb_nchw):
  """im2col grouped by pool member / pool row, batch padded to 8 rows.

  Output (224, 252): row = member*56 + pool_row*8 + batch,
                     col = pool_col*36 + ((ki*3+kj)*4 + cin).
  Pure data movement (could be replaced by lax.conv_general_dilated_patches if
  this XLA glue ever shows up on the critical path).
  """
  x = jnp.transpose(vb_nchw.astype(jnp.float32), (0, 2, 3, 1))          # NCHW -> NHWC
  cols = jnp.concatenate(
      [x[:, i:i + CONV_H, j:j + CONV_W, :]
       for i in range(CONV_K) for j in range(CONV_K)], axis=-1)         # (B,14,14,36)
  slabs = []
  for mr in range(POOL_K):
    for mc in range(POOL_K):
      g = cols[:, mr::POOL_S, mc::POOL_S, :]                            # (B,7,7,36)
      g = jnp.transpose(g, (1, 0, 2, 3))                                # (7,B,7,36)
      g = g.reshape(POOL_H, B, BLK_K)                                   # (7,B,252)
      g = jnp.pad(g, ((0, 0), (0, BPAD - B), (0, 0)))                   # (7,8,252)
      slabs.append(g.reshape(POOL_H * BPAD, BLK_K))                     # (56,252)
  return jnp.concatenate(slabs, axis=0)                                 # (224,252)


def prepare_params(params):
  """Derive kernel-layout tensors and pack them into one (PACK_ROWS,128) slab."""
  f32 = jnp.float32
  derived = {
      'w_bb1': params['w_bb1'], 'b_bb1': params['b_bb1'],
      'w_bb2': params['w_bb2'], 'b_bb2': params['b_bb2'],
      # block-diagonal conv weight: one (36,8) block per pool column
      'w_conv_blk': jnp.kron(jnp.eye(POOL_W, dtype=f32), params['wc']),
      'b_conv': jnp.tile(params['bc'], (1, POOL_W)),
      'w_cnn_lin': params['wcl'], 'b_cnn_lin': params['bcl'],
      'wv1_bb': params['wv1'][:BB_OUT], 'wv1_cnn': params['wv1'][BB_OUT:],
      'bv1': params['bv1'],
      'wv2': params['wv2'], 'bv2': params['bv2'],
      'wv3': jnp.pad(params['wv3'], ((0, 0), (0, 32 - LATENT_VF))),
      'bv3': jnp.pad(params['bv3'], ((0, 0), (0, 32 - LATENT_VF))),
      'wp1_bb': params['wp1'][:BB_OUT], 'wp1_cnn': params['wp1'][BB_OUT:],
      'bp1': params['bp1'],
      'wp2': params['wp2'], 'bp2': params['bp2'],
      'wp3': params['wp3'], 'bp3': params['bp3'],
  }
  buf = jnp.zeros((PACK_ROWS, PACK_COLS), f32)
  for name, (off, rows, cols) in _PARAM_LAYOUT.items():
    arr = jnp.asarray(derived[name], f32)
    assert arr.shape == (rows, cols), (name, arr.shape, (rows, cols))
    buf = buf.at[off:off + rows, 0:cols].set(arr)
  return buf


_VMEM = pl.BlockSpec(memory_space=pltpu.MemorySpace.VMEM)


@jax.jit
def mlp_extractor_forward(data, packed_params):
  bb = data['bitboard'].astype(jnp.float32).reshape(B, BB_SIZE)
  bb = jnp.pad(bb, ((0, BPAD - B), (0, 0)))                                # (8, 64)
  mask = jnp.pad(data['mask'].astype(jnp.float32),
                 ((0, BPAD - B), (0, 0)), constant_values=1.0)             # (8, 32)
  patches = _build_conv_patches(data['virtual_board'])                     # (224, 252)

  out = pl.pallas_call(
      mlp_extractor_kernel,
      out_shape=jax.ShapeDtypeStruct((BPAD, OUT_COLS), jnp.float32),
      in_specs=[_VMEM, _VMEM, _VMEM, _VMEM],
      out_specs=_VMEM,
  )(bb, patches, mask, packed_params)

  final_emb = out[:B, 0:INPUT_DIM]
  logp = out[:B, INPUT_DIM:INPUT_DIM + LATENT_PI]
  val = out[:B, INPUT_DIM + LATENT_PI:INPUT_DIM + LATENT_PI + LATENT_VF]
  return final_emb, logp, val


# ------------------------------ parameter init -------------------------------
def init_params(key):
  def linear(k, fan_in, fan_out):
    kw, kb = jax.random.split(k)
    w = jax.random.normal(kw, (fan_in, fan_out), jnp.float32) / jnp.sqrt(float(fan_in))
    b = jax.random.normal(kb, (1, fan_out), jnp.float32) * 0.01
    return w, b

  ks = jax.random.split(key, 11)
  p = {}
  p['w_bb1'], p['b_bb1'] = linear(ks[0], BB_SIZE, BB_HIDDEN)
  p['w_bb2'], p['b_bb2'] = linear(ks[1], BB_HIDDEN, BB_OUT)
  # conv weight generated in (kh, kw, cin, cout) layout, flattened for im2col matmul
  p['wc'] = (jax.random.normal(ks[2], (CONV_K, CONV_K, VB_C, CNN_OUT_CH), jnp.float32)
             / jnp.sqrt(float(PATCH_DIM))).reshape(PATCH_DIM, CNN_OUT_CH)
  p['bc'] = jax.random.normal(ks[3], (1, CNN_OUT_CH), jnp.float32) * 0.01
  # cnn_linear weight: flatten order (pool_row, pool_col, channel)
  p['wcl'], p['bcl'] = linear(ks[4], N_FLAT, CNN_OUT)
  p['wv1'], p['bv1'] = linear(ks[5], INPUT_DIM, VAL_H1)
  p['wv2'], p['bv2'] = linear(ks[6], VAL_H1, VAL_H2)
  p['wv3'], p['bv3'] = linear(ks[7], VAL_H2, LATENT_VF)
  p['wp1'], p['bp1'] = linear(ks[8], INPUT_DIM, POL_H1)
  p['wp2'], p['bp2'] = linear(ks[9], POL_H1, POL_H2)
  p['wp3'], p['bp3'] = linear(ks[10], POL_H2, LATENT_PI)
  return p


# ------------------------------ pure-JAX reference ---------------------------
def reference_forward(data, p):
  relu = lambda x: jnp.maximum(x, 0.0)
  bb = data['bitboard'].astype(jnp.float32).reshape(B, BB_SIZE)
  bb_emb = relu(relu(bb @ p['w_bb1'] + p['b_bb1']) @ p['w_bb2'] + p['b_bb2'])

  x = jnp.transpose(data['virtual_board'].astype(jnp.float32), (0, 2, 3, 1))
  w_hwio = p['wc'].reshape(CONV_K, CONV_K, VB_C, CNN_OUT_CH)
  conv = lax.conv_general_dilated(
      x, w_hwio, window_strides=(1, 1), padding='VALID',
      dimension_numbers=('NHWC', 'HWIO', 'NHWC'))
  conv = relu(conv + p['bc'].reshape(1, 1, 1, -1))
  pooled = lax.reduce_window(conv, -jnp.inf, lax.max,
                             (1, POOL_K, POOL_K, 1), (1, POOL_S, POOL_S, 1), 'VALID')
  pooled = relu(pooled)
  cnn_emb = relu(pooled.reshape(B, N_FLAT) @ p['wcl'] + p['bcl'])

  emb = jnp.concatenate([bb_emb, cnn_emb], axis=-1)
  v = jnp.tanh(emb @ p['wv1'] + p['bv1'])
  v = jnp.tanh(v @ p['wv2'] + p['bv2'])
  val = v @ p['wv3'] + p['bv3']
  pz = relu(emb @ p['wp1'] + p['bp1'])
  pz = relu(pz @ p['wp2'] + p['bp2'])
  logits = pz @ p['wp3'] + p['bp3']
  vec = logits + jnp.log(data['mask'].astype(jnp.float32) + 1e-45)
  logp = jax.nn.log_softmax(vec, axis=-1)
  return emb, logp, val


# ----------------------------------- main ------------------------------------
if __name__ == "__main__":
  key = jax.random.PRNGKey(0)
  k_bb, k_vb, k_mask, k_par = jax.random.split(key, 4)

  mask = (jax.random.uniform(k_mask, (B, LATENT_PI)) > 0.3).astype(jnp.float32)
  mask = mask.at[:, 0].set(1.0)   # never fully masked
  data = {
      'bitboard': jax.random.normal(k_bb, (B,) + BITBOARD_SHAPE, jnp.float32),
      'virtual_board': jax.random.normal(k_vb, (B, VB_C, VB_H, VB_W), jnp.float32),
      'mask': mask,
  }
  params = init_params(k_par)
  packed = prepare_params(params)        # done once; single parameter DMA per call

  emb, logp, val = mlp_extractor_forward(data, packed)
  jax.block_until_ready((emb, logp, val))

  # correctness check against the pure-JAX reference
  emb_r, logp_r, val_r = reference_forward(data, params)
  assert emb.shape == (B, INPUT_DIM) and logp.shape == (B, LATENT_PI) and val.shape == (B, LATENT_VF)
  assert not bool(jnp.any(jnp.isnan(logp)))
  assert jnp.allclose(emb, emb_r, atol=2e-3, rtol=2e-3)
  assert jnp.allclose(val, val_r, atol=2e-3, rtol=2e-3)
  keep = mask > 0   # masked positions are "arbitrary but very negative" per the docstring
  assert jnp.allclose(jnp.where(keep, logp, 0.0), jnp.where(keep, logp_r, 0.0),
                      atol=2e-3, rtol=2e-3)

  print("KERNEL_OK")
</pallas_src>

<mosaic_0001>
module attributes {stable_mosaic.version = 11 : i64} {
  func.func @mlp_extractor_kernel(%arg0: memref<8x64xf32, #tpu.memory_space<vmem>>, %arg1: memref<224x252xf32, #tpu.memory_space<vmem>>, %arg2: memref<8x32xf32, #tpu.memory_space<vmem>>, %arg3: memref<1144x128xf32, #tpu.memory_space<vmem>>, %arg4: memref<8x128xf32, #tpu.memory_space<vmem>>) attributes {dimension_semantics = [], scalar_prefetch = 0 : i64, scratch_operands = 0 : i64, tpu.core_type = #tpu.core_type<tc>} {
    %c0 = arith.constant 0 : index
    %c0_0 = arith.constant 0 : index
    %0 = vector.load %arg0[%c0, %c0_0] : memref<8x64xf32, #tpu.memory_space<vmem>>, vector<8x64xf32>
    %c0_1 = arith.constant 0 : index
    %c0_2 = arith.constant 0 : index
    %1 = vector.load %arg3[%c0_1, %c0_2] : memref<1144x128xf32, #tpu.memory_space<vmem>>, vector<64x32xf32>
    %cst = arith.constant dense<0.000000e+00> : vector<8x32xf32>
    %2 = tpu.matmul %0, %1, %cst {dimension_numbers = #tpu.dot_dimension_numbers<[1], [0], [0], [1], [0, 0, 1, 1], [], []>} : vector<8x64xf32>, vector<64x32xf32>, vector<8x32xf32> -> vector<8x32xf32>
    %c64 = arith.constant 64 : index
    %c0_3 = arith.constant 0 : index
    %3 = vector.load %arg3[%c64, %c0_3] : memref<1144x128xf32, #tpu.memory_space<vmem>>, vector<1x32xf32>
    %4 = vector.broadcast %3 : vector<1x32xf32> to vector<8x32xf32>
    %5 = arith.addf %2, %4 : vector<8x32xf32>
    %cst_4 = arith.constant 0.000000e+00 : f32
    %6 = vector.broadcast %cst_4 : f32 to vector<8x32xf32>
    %7 = arith.maximumf %5, %6 : vector<8x32xf32>
    %c72 = arith.constant 72 : index
    %c0_5 = arith.constant 0 : index
    %8 = vector.load %arg3[%c72, %c0_5] : memref<1144x128xf32, #tpu.memory_space<vmem>>, vector<32x32xf32>
    %cst_6 = arith.constant dense<0.000000e+00> : vector<8x32xf32>
    %9 = tpu.matmul %7, %8, %cst_6 {dimension_numbers = #tpu.dot_dimension_numbers<[1], [0], [0], [1], [0, 0, 1, 1], [], []>} : vector<8x32xf32>, vector<32x32xf32>, vector<8x32xf32> -> vector<8x32xf32>
    %c104 = arith.constant 104 : index
    %c0_7 = arith.constant 0 : index
    %10 = vector.load %arg3[%c104, %c0_7] : memref<1144x128xf32, #tpu.memory_space<vmem>>, vector<1x32xf32>
    %11 = vector.broadcast %10 : vector<1x32xf32> to vector<8x32xf32>
    %12 = arith.addf %9, %11 : vector<8x32xf32>
    %cst_8 = arith.constant 0.000000e+00 : f32
    %13 = vector.broadcast %cst_8 : f32 to vector<8x32xf32>
    %14 = arith.maximumf %12, %13 : vector<8x32xf32>
    %c0_9 = arith.constant 0 : index
    %c0_10 = arith.constant 0 : index
    %15 = vector.load %arg1[%c0_9, %c0_10] : memref<224x252xf32, #tpu.memory_space<vmem>>, vector<224x252xf32>
    %c112 = arith.constant 112 : index
    %c0_11 = arith.constant 0 : index
    %16 = vector.load %arg3[%c112, %c0_11] : memref<1144x128xf32, #tpu.memory_space<vmem>>, vector<252x56xf32>
    %cst_12 = arith.constant dense<0.000000e+00> : vector<224x56xf32>
    %17 = tpu.matmul %15, %16, %cst_12 {dimension_numbers = #tpu.dot_dimension_numbers<[1], [0], [0], [1], [0, 0, 1, 1], [], []>} : vector<224x252xf32>, vector<252x56xf32>, vector<224x56xf32> -> vector<224x56xf32>
    %18 = vector.extract_strided_slice %17 {offsets = [0, 0], sizes = [56, 56], strides = [1, 1]} : vector<224x56xf32> to vector<56x56xf32>
    %19 = vector.extract_strided_slice %17 {offsets = [56, 0], sizes = [56, 56], strides = [1, 1]} : vector<224x56xf32> to vector<56x56xf32>
    %20 = arith.maximumf %18, %19 : vector<56x56xf32>
    %21 = vector.extract_strided_slice %17 {offsets = [112, 0], sizes = [56, 56], strides = [1, 1]} : vector<224x56xf32> to vector<56x56xf32>
    %22 = arith.maximumf %20, %21 : vector<56x56xf32>
    %23 = vector.extract_strided_slice %17 {offsets = [168, 0], sizes = [56, 56], strides = [1, 1]} : vector<224x56xf32> to vector<56x56xf32>
    %24 = arith.maximumf %22, %23 : vector<56x56xf32>
    %c368 = arith.constant 368 : index
    %c0_13 = arith.constant 0 : index
    %25 = vector.load %arg3[%c368, %c0_13] : memref<1144x128xf32, #tpu.memory_space<vmem>>, vector<1x56xf32>
    %26 = vector.broadcast %25 : vector<1x56xf32> to vector<56x56xf32>
    %27 = arith.addf %24, %26 : vector<56x56xf32>
    %cst_14 = arith.constant 0.000000e+00 : f32
    %28 = vector.broadcast %cst_14 : f32 to vector<56x56xf32>
    %29 = arith.maximumf %27, %28 : vector<56x56xf32>
    %c376 = arith.constant 376 : index
    %c0_15 = arith.constant 0 : index
    %30 = vector.load %arg3[%c376, %c0_15] : memref<1144x128xf32, #tpu.memory_space<vmem>>, vector<392x32xf32>
    %31 = vector.extract_strided_slice %29 {offsets = [0, 0], sizes = [8, 56], strides = [1, 1]} : vector<56x56xf32> to vector<8x56xf32>
    %32 = vector.extract_strided_slice %30 {offsets = [0, 0], sizes = [56, 32], strides = [1, 1]} : vector<392x32xf32> to vector<56x32xf32>
    %cst_16 = arith.constant dense<0.000000e+00> : vector<8x32xf32>
    %33 = tpu.matmul %31, %32, %cst_16 {dimension_numbers = #tpu.dot_dimension_numbers<[1], [0], [0], [1], [0, 0, 1, 1], [], []>} : vector<8x56xf32>, vector<56x32xf32>, vector<8x32xf32> -> vector<8x32xf32>
    %34 = vector.extract_strided_slice %29 {offsets = [8, 0], sizes = [8, 56], strides = [1, 1]} : vector<56x56xf32> to vector<8x56xf32>
    %35 = vector.extract_strided_slice %30 {offsets = [56, 0], sizes = [56, 32], strides = [1, 1]} : vector<392x32xf32> to vector<56x32xf32>
    %cst_17 = arith.constant dense<0.000000e+00> : vector<8x32xf32>
    %36 = tpu.matmul %34, %35, %cst_17 {dimension_numbers = #tpu.dot_dimension_numbers<[1], [0], [0], [1], [0, 0, 1, 1], [], []>} : vector<8x56xf32>, vector<56x32xf32>, vector<8x32xf32> -> vector<8x32xf32>
    %37 = arith.addf %33, %36 : vector<8x32xf32>
    %38 = vector.extract_strided_slice %29 {offsets = [16, 0], sizes = [8, 56], strides = [1, 1]} : vector<56x56xf32> to vector<8x56xf32>
    %39 = vector.extract_strided_slice %30 {offsets = [112, 0], sizes = [56, 32], strides = [1, 1]} : vector<392x32xf32> to vector<56x32xf32>
    %cst_18 = arith.constant dense<0.000000e+00> : vector<8x32xf32>
    %40 = tpu.matmul %38, %39, %cst_18 {dimension_numbers = #tpu.dot_dimension_numbers<[1], [0], [0], [1], [0, 0, 1, 1], [], []>} : vector<8x56xf32>, vector<56x32xf32>, vector<8x32xf32> -> vector<8x32xf32>
    %41 = arith.addf %37, %40 : vector<8x32xf32>
    %42 = vector.extract_strided_slice %29 {offsets = [24, 0], sizes = [8, 56], strides = [1, 1]} : vector<56x56xf32> to vector<8x56xf32>
    %43 = vector.extract_strided_slice %30 {offsets = [168, 0], sizes = [56, 32], strides = [1, 1]} : vector<392x32xf32> to vector<56x32xf32>
    %cst_19 = arith.constant dense<0.000000e+00> : vector<8x32xf32>
    %44 = tpu.matmul %42, %43, %cst_19 {dimension_numbers = #tpu.dot_dimension_numbers<[1], [0], [0], [1], [0, 0, 1, 1], [], []>} : vector<8x56xf32>, vector<56x32xf32>, vector<8x32xf32> -> vector<8x32xf32>
    %45 = arith.addf %41, %44 : vector<8x32xf32>
    %46 = vector.extract_strided_slice %29 {offsets = [32, 0], sizes = [8, 56], strides = [1, 1]} : vector<56x56xf32> to vector<8x56xf32>
    %47 = vector.extract_strided_slice %30 {offsets = [224, 0], sizes = [56, 32], strides = [1, 1]} : vector<392x32xf32> to vector<56x32xf32>
    %cst_20 = arith.constant dense<0.000000e+00> : vector<8x32xf32>
    %48 = tpu.matmul %46, %47, %cst_20 {dimension_numbers = #tpu.dot_dimension_numbers<[1], [0], [0], [1], [0, 0, 1, 1], [], []>} : vector<8x56xf32>, vector<56x32xf32>, vector<8x32xf32> -> vector<8x32xf32>
    %49 = arith.addf %45, %48 : vector<8x32xf32>
    %50 = vector.extract_strided_slice %29 {offsets = [40, 0], sizes = [8, 56], strides = [1, 1]} : vector<56x56xf32> to vector<8x56xf32>
    %51 = vector.extract_strided_slice %30 {offsets = [280, 0], sizes = [56, 32], strides = [1, 1]} : vector<392x32xf32> to vector<56x32xf32>
    %cst_21 = arith.constant dense<0.000000e+00> : vector<8x32xf32>
    %52 = tpu.matmul %50, %51, %cst_21 {dimension_numbers = #tpu.dot_dimension_numbers<[1], [0], [0], [1], [0, 0, 1, 1], [], []>} : vector<8x56xf32>, vector<56x32xf32>, vector<8x32xf32> -> vector<8x32xf32>
    %53 = arith.addf %49, %52 : vector<8x32xf32>
    %54 = vector.extract_strided_slice %29 {offsets = [48, 0], sizes = [8, 56], strides = [1, 1]} : vector<56x56xf32> to vector<8x56xf32>
    %55 = vector.extract_strided_slice %30 {offsets = [336, 0], sizes = [56, 32], strides = [1, 1]} : vector<392x32xf32> to vector<56x32xf32>
    %cst_22 = arith.constant dense<0.000000e+00> : vector<8x32xf32>
    %56 = tpu.matmul %54, %55, %cst_22 {dimension_numbers = #tpu.dot_dimension_numbers<[1], [0], [0], [1], [0, 0, 1, 1], [], []>} : vector<8x56xf32>, vector<56x32xf32>, vector<8x32xf32> -> vector<8x32xf32>
    %57 = arith.addf %53, %56 : vector<8x32xf32>
    %c768 = arith.constant 768 : index
    %c0_23 = arith.constant 0 : index
    %58 = vector.load %arg3[%c768, %c0_23] : memref<1144x128xf32, #tpu.memory_space<vmem>>, vector<1x32xf32>
    %59 = vector.broadcast %58 : vector<1x32xf32> to vector<8x32xf32>
    %60 = arith.addf %57, %59 : vector<8x32xf32>
    %cst_24 = arith.constant 0.000000e+00 : f32
    %61 = vector.broadcast %cst_24 : f32 to vector<8x32xf32>
    %62 = arith.maximumf %60, %61 : vector<8x32xf32>
    %c776 = arith.constant 776 : index
    %c0_25 = arith.constant 0 : index
    %63 = vector.load %arg3[%c776, %c0_25] : memref<1144x128xf32, #tpu.memory_space<vmem>>, vector<32x32xf32>
    %cst_26 = arith.constant dense<0.000000e+00> : vector<8x32xf32>
    %64 = tpu.matmul %14, %63, %cst_26 {dimension_numbers = #tpu.dot_dimension_numbers<[1], [0], [0], [1], [0, 0, 1, 1], [], []>} : vector<8x32xf32>, vector<32x32xf32>, vector<8x32xf32> -> vector<8x32xf32>
    %c808 = arith.constant 808 : index
    %c0_27 = arith.constant 0 : index
    %65 = vector.load %arg3[%c808, %c0_27] : memref<1144x128xf32, #tpu.memory_space<vmem>>, vector<32x32xf32>
    %cst_28 = arith.constant dense<0.000000e+00> : vector<8x32xf32>
    %66 = tpu.matmul %62, %65, %cst_28 {dimension_numbers = #tpu.dot_dimension_numbers<[1], [0], [0], [1], [0, 0, 1, 1], [], []>} : vector<8x32xf32>, vector<32x32xf32>, vector<8x32xf32> -> vector<8x32xf32>
    %67 = arith.addf %64, %66 : vector<8x32xf32>
    %c840 = arith.constant 840 : index
    %c0_29 = arith.constant 0 : index
    %68 = vector.load %arg3[%c840, %c0_29] : memref<1144x128xf32, #tpu.memory_space<vmem>>, vector<1x32xf32>
    %69 = vector.broadcast %68 : vector<1x32xf32> to vector<8x32xf32>
    %70 = arith.addf %67, %69 : vector<8x32xf32>
    %71 = math.tanh %70 : vector<8x32xf32>
    %c848 = arith.constant 848 : index
    %c0_30 = arith.constant 0 : index
    %72 = vector.load %arg3[%c848, %c0_30] : memref<1144x128xf32, #tpu.memory_space<vmem>>, vector<32x32xf32>
    %cst_31 = arith.constant dense<0.000000e+00> : vector<8x32xf32>
    %73 = tpu.matmul %71, %72, %cst_31 {dimension_numbers = #tpu.dot_dimension_numbers<[1], [0], [0], [1], [0, 0, 1, 1], [], []>} : vector<8x32xf32>, vector<32x32xf32>, vector<8x32xf32> -> vector<8x32xf32>
    %c880 = arith.constant 880 : index
    %c0_32 = arith.constant 0 : index
    %74 = vector.load %arg3[%c880, %c0_32] : memref<1144x128xf32, #tpu.memory_space<vmem>>, vector<1x32xf32>
    %75 = vector.broadcast %74 : vector<1x32xf32> to vector<8x32xf32>
    %76 = arith.addf %73, %75 : vector<8x32xf32>
    %77 = math.tanh %76 : vector<8x32xf32>
    %c888 = arith.constant 888 : index
    %c0_33 = arith.constant 0 : index
    %78 = vector.load %arg3[%c888, %c0_33] : memref<1144x128xf32, #tpu.memory_space<vmem>>, vector<32x32xf32>
    %cst_34 = arith.constant dense<0.000000e+00> : vector<8x32xf32>
    %79 = tpu.matmul %77, %78, %cst_34 {dimension_numbers = #tpu.dot_dimension_numbers<[1], [0], [0], [1], [0, 0, 1, 1], [], []>} : vector<8x32xf32>, vector<32x32xf32>, vector<8x32xf32> -> vector<8x32xf32>
    %c920 = arith.constant 920 : index
    %c0_35 = arith.constant 0 : index
    %80 = vector.load %arg3[%c920, %c0_35] : memref<1144x128xf32, #tpu.memory_space<vmem>>, vector<1x32xf32>
    %81 = vector.broadcast %80 : vector<1x32xf32> to vector<8x32xf32>
    %82 = arith.addf %79, %81 : vector<8x32xf32>
    %c928 = arith.constant 928 : index
    %c0_36 = arith.constant 0 : index
    %83 = vector.load %arg3[%c928, %c0_36] : memref<1144x128xf32, #tpu.memory_space<vmem>>, vector<32x64xf32>
    %cst_37 = arith.constant dense<0.000000e+00> : vector<8x64xf32>
    %84 = tpu.matmul %14, %83, %cst_37 {dimension_numbers = #tpu.dot_dimension_numbers<[1], [0], [0], [1], [0, 0, 1, 1], [], []>} : vector<8x32xf32>, vector<32x64xf32>, vector<8x64xf32> -> vector<8x64xf32>
    %c960 = arith.constant 960 : index
    %c0_38 = arith.constant 0 : index
    %85 = vector.load %arg3[%c960, %c0_38] : memref<1144x128xf32, #tpu.memory_space<vmem>>, vector<32x64xf32>
    %cst_39 = arith.constant dense<0.000000e+00> : vector<8x64xf32>
    %86 = tpu.matmul %62, %85, %cst_39 {dimension_numbers = #tpu.dot_dimension_numbers<[1], [0], [0], [1], [0, 0, 1, 1], [], []>} : vector<8x32xf32>, vector<32x64xf32>, vector<8x64xf32> -> vector<8x64xf32>
    %87 = arith.addf %84, %86 : vector<8x64xf32>
    %c992 = arith.constant 992 : index
    %c0_40 = arith.constant 0 : index
    %88 = vector.load %arg3[%c992, %c0_40] : memref<1144x128xf32, #tpu.memory_space<vmem>>, vector<1x64xf32>
    %89 = vector.broadcast %88 : vector<1x64xf32> to vector<8x64xf32>
    %90 = arith.addf %87, %89 : vector<8x64xf32>
    %cst_41 = arith.constant 0.000000e+00 : f32
    %91 = vector.broadcast %cst_41 : f32 to vector<8x64xf32>
    %92 = arith.maximumf %90, %91 : vector<8x64xf32>
    %c1000 = arith.constant 1000 : index
    %c0_42 = arith.constant 0 : index
    %93 = vector.load %arg3[%c1000, %c0_42] : memref<1144x128xf32, #tpu.memory_space<vmem>>, vector<64x64xf32>
    %cst_43 = arith.constant dense<0.000000e+00> : vector<8x64xf32>
    %94 = tpu.matmul %92, %93, %cst_43 {dimension_numbers = #tpu.dot_dimension_numbers<[1], [0], [0], [1], [0, 0, 1, 1], [], []>} : vector<8x64xf32>, vector<64x64xf32>, vector<8x64xf32> -> vector<8x64xf32>
    %c1064 = arith.constant 1064 : index
    %c0_44 = arith.constant 0 : index
    %95 = vector.load %arg3[%c1064, %c0_44] : memref<1144x128xf32, #tpu.memory_space<vmem>>, vector<1x64xf32>
    %96 = vector.broadcast %95 : vector<1x64xf32> to vector<8x64xf32>
    %97 = arith.addf %94, %96 : vector<8x64xf32>
    %cst_45 = arith.constant 0.000000e+00 : f32
    %98 = vector.broadcast %cst_45 : f32 to vector<8x64xf32>
    %99 = arith.maximumf %97, %98 : vector<8x64xf32>
    %c1072 = arith.constant 1072 : index
    %c0_46 = arith.constant 0 : index
    %100 = vector.load %arg3[%c1072, %c0_46] : memref<1144x128xf32, #tpu.memory_space<vmem>>, vector<64x32xf32>
    %cst_47 = arith.constant dense<0.000000e+00> : vector<8x32xf32>
    %101 = tpu.matmul %99, %100, %cst_47 {dimension_numbers = #tpu.dot_dimension_numbers<[1], [0], [0], [1], [0, 0, 1, 1], [], []>} : vector<8x64xf32>, vector<64x32xf32>, vector<8x32xf32> -> vector<8x32xf32>
    %c1136 = arith.constant 1136 : index
    %c0_48 = arith.constant 0 : index
    %102 = vector.load %arg3[%c1136, %c0_48] : memref<1144x128xf32, #tpu.memory_space<vmem>>, vector<1x32xf32>
    %103 = vector.broadcast %102 : vector<1x32xf32> to vector<8x32xf32>
    %104 = arith.addf %101, %103 : vector<8x32xf32>
    %c0_49 = arith.constant 0 : index
    %c0_50 = arith.constant 0 : index
    %105 = vector.load %arg2[%c0_49, %c0_50] : memref<8x32xf32, #tpu.memory_space<vmem>>, vector<8x32xf32>
    %cst_51 = arith.constant 0.000000e+00 : f32
    %106 = vector.broadcast %cst_51 : f32 to vector<8x32xf32>
    %107 = arith.cmpf ogt, %105, %106 : vector<8x32xf32>
    %cst_52 = arith.constant -1.000000e+30 : f32
    %108 = vector.broadcast %cst_52 : f32 to vector<8x32xf32>
    %109 = arith.select %107, %104, %108 : vector<8x32xi1>, vector<8x32xf32>
    %cst_53 = arith.constant dense<0xFF800000> : vector<8xf32>
    %110 = vector.multi_reduction <maximumf>, %109, %cst_53 [1] : vector<8x32xf32> to vector<8xf32>
    %111 = vector.shape_cast %110 : vector<8xf32> to vector<8x1xf32>
    %112 = vector.broadcast %111 : vector<8x1xf32> to vector<8x32xf32>
    %113 = arith.subf %109, %112 : vector<8x32xf32>
    %114 = math.exp %113 : vector<8x32xf32>
    %cst_54 = arith.constant dense<0.000000e+00> : vector<8xf32>
    %115 = vector.multi_reduction <add>, %114, %cst_54 [1] : vector<8x32xf32> to vector<8xf32>
    %116 = vector.shape_cast %115 : vector<8xf32> to vector<8x1xf32>
    %117 = math.log %116 : vector<8x1xf32>
    %118 = arith.addf %111, %117 : vector<8x1xf32>
    %119 = vector.broadcast %118 : vector<8x1xf32> to vector<8x32xf32>
    %120 = arith.subf %109, %119 : vector<8x32xf32>
    %121 = tpu.concatenate %14, %62, %120, %82 in 1 : vector<8x32xf32>, vector<8x32xf32>, vector<8x32xf32>, vector<8x32xf32> -> vector<8x128xf32>
    %c0_55 = arith.constant 0 : index
    %c0_56 = arith.constant 0 : index
    %122 = vector.load %arg4[%c0_55, %c0_56] : memref<8x128xf32, #tpu.memory_space<vmem>>, vector<8x128xf32>
    tpu.vector_store %arg4[%c0_55, %c0_56], %121 {strides = array<i32>} : memref<8x128xf32, #tpu.memory_space<vmem>>, vector<8x128xf32>,
    return
  }
}

</mosaic_0001>

<bundles_post_ra>
// kernel: mlp_extractor_forward.1
= control target key start
LH: loop header
LB: loop body
LE: loop exit
PB: predicated region body
PF: predicated region fallthrough
CT: control target
= control target key end

     0   :  { %v2315_v0 = vmov 0.0   ;;  %vm2316_vm0 = vmmov 0   ;;  %vm31_vm1 = vcmask 523264   ;;  %vm115_vm2 = vcmask 261120   ;;  %s2317_s6 = smov 32   ;;  %s2319_s7 = smov 64   ;;  %s3231_s3 = inlined_call_operand.vmem [shape: f32[1144,128], index: 3, kind: input, shape index: {}]   ;;  %s3232_s0 = inlined_call_operand.vmem [shape: f32[8,64], index: 0, kind: input, shape index: {}]   ;;  %s3233_s1 = inlined_call_operand.vmem [shape: f32[224,252], index: 1, kind: input, shape index: {}]   ;;  %s3234_s2 = inlined_call_operand.vmem [shape: f32[8,32], index: 2, kind: input, shape index: {}]   ;;  %s3235_s4 = inlined_call_operand.vmem [shape: f32[8,128], index: 4, kind: output, shape index: {}]  }
   0x1   :  { %2049 = vmatprep.subr.mxu0 %v2315_v0  ;;  %v25_v1 = vld [vmem:[%s3231_s3 + $0x38] sm:$0xff]  ;;  %v24_v2 = vld [vmem:[%s3231_s3 + $0x30] sm:$0xff]  ;;  %2065 = vmatprep.mubr.msk.f32.mxu0 %vm2316_vm0, %v2315_v0  ;;  %v23_v3 = vld [vmem:[%s3231_s3 + $0x28] sm:$0xff]  ;;  %vm278_vm3 = vcmask 1014784   ;;  %vm363_vm4 = vcmask 1043456   ;;  %vm661_vm5 = vcmask 457728  }
   0x2   :  { %2050 = vmatpush3.msra.mxu0 %v25_v1  ;;  %2068 = vmatprep.subr.mxu1 %v2315_v0  ;;  %v109_v4 = vld [vmem:[%s3231_s3 + $0x60] sm:$0xff]  ;;  %v108_v5 = vld [vmem:[%s3231_s3 + $0x58] sm:$0xff]  ;;  %v20_v8 = vld [vmem:[%s3231_s3 + $0x10] sm:$0xff]  ;;  %vm1868_vm7 = vcmask 785408  }
   0x3   :  { %2051 = vmatprep.subr.mxu0 %v2315_v0  ;;  %2076 = vmatprep.mubr.msk.f32.mxu1 %vm2316_vm0, %v2315_v0  ;;  %v22_v6 = vld [vmem:[%s3231_s3 + $0x20] sm:$0xff]  ;;  %v21_v7 = vld [vmem:[%s3231_s3 + $0x18] sm:$0xff]  ;;  %v19_v9 = vld [vmem:[%s3231_s3 + $0x8] sm:$0xff] }
   0x4   :  { %2052 = vmatpush3.msra.mxu0 %v24_v2  ;;  %2069 = vmatpush3.msra.mxu1 %v109_v4  ;;  %v18_v10 = vld [vmem:[%s3231_s3] sm:$0xff]  ;;  %v107_v12 = vld [vmem:[%s3231_s3 + $0x50] sm:$0xff]  ;;  %v106_v13 = vld [vmem:[%s3231_s3 + $0x48] sm:$0xff] }
   0x5   :  { %2053 = vmatprep.subr.mxu0 %v2315_v0  ;;  %2070 = vmatprep.subr.mxu1 %v2315_v0  ;;  %v17_v11 = vld [vmem:[%s3232_s0] sm:$0xff]  ;;  %v261_v19 = vld [vmem:[%s3231_s3 + $0xe8] sm:$0xff]  ;;  %v259_v22 = vld [vmem:[%s3231_s3 + $0xd8] sm:$0xff] }
   0x6   :  { %2054 = vmatpush3.msra.mxu0 %v23_v3  ;;  %2071 = vmatpush3.msra.mxu1 %v108_v5  ;;  %v1875_v14 = vld [vmem:[%s3231_s3 + $0x40] ss:$0 sm:$0xff]  ;;  %v191_v20 = vld [vmem:[%s3233_s1 + $0x8] sm:$0xff]  ;;  %v258_v23 = vld [vmem:[%s3231_s3 + $0xd0] sm:$0xff] }
   0x7   :  { %2055 = vmatprep.subr.mxu0 %v2315_v0  ;;  %2072 = vmatprep.subr.mxu1 %v2315_v0  ;;  %v260_v21 = vld [vmem:[%s3231_s3 + $0xe0] sm:$0xff]  ;;  %v257_v24 = vld [vmem:[%s3231_s3 + $0xc8] sm:$0xff]  ;;  %v255_v26 = vld [vmem:[%s3231_s3 + $0xb8] sm:$0xff] }
   0x8   :  { %2056 = vmatpush3.msra.mxu0 %v22_v6  ;;  %2073 = vmatpush3.msra.mxu1 %v107_v12  ;;  %v256_v25 = vld [vmem:[%s3231_s3 + $0xc0] sm:$0xff]  ;;  %v254_v27 = vld [vmem:[%s3231_s3 + $0xb0] sm:$0xff]  ;;  %v253_v28 = vld [vmem:[%s3231_s3 + $0xa8] sm:$0xff] }
   0x9   :  { %2057 = vmatprep.subr.mxu0 %v2315_v0  ;;  %2074 = vmatprep.subr.mxu1 %v2315_v0  ;;  %v252_v29 = vld [vmem:[%s3231_s3 + $0xa0] sm:$0xff]  ;;  %v251_v30 = vld [vmem:[%s3231_s3 + $0x98] sm:$0xff]  ;;  %v250_v31 = vld [vmem:[%s3231_s3 + $0x90] sm:$0xff] }
   0xa   :  { %2058 = vmatpush3.msra.mxu0 %v21_v7  ;;  %2075 = vmatpush3.msra.mxu1 %v106_v13  ;;  %v249_v32 = vld [vmem:[%s3231_s3 + $0x88] sm:$0xff]  ;;  %v248_v33 = vld [vmem:[%s3231_s3 + $0x80] sm:$0xff]  ;;  %v247_v34 = vld [vmem:[%s3231_s3 + $0x78] sm:$0xff] }
   0xb   :  { %2059 = vmatprep.subr.mxu0 %v2315_v0  ;;  %367 = vmatprep.subr.mxu1 %v2315_v0  ;;  %v246_v35 = vld [vmem:[%s3231_s3 + $0x70] sm:$0xff]  ;;  %v277_v36 = vld [vmem:[%s3231_s3 + $0x168] sm:$0xf]  ;;  %v276_v37 = vld [vmem:[%s3231_s3 + $0x160] sm:$0xff] }
   0xc   :  { %2060 = vmatpush3.msra.mxu0 %v20_v8  ;;  %v275_v38 = vld [vmem:[%s3231_s3 + $0x158] sm:$0xff]  ;;  %v274_v39 = vld [vmem:[%s3231_s3 + $0x150] sm:$0xff]  ;;  %v273_v40 = vld [vmem:[%s3231_s3 + $0x148] sm:$0xff] }
   0xd   :  { %2061 = vmatprep.subr.mxu0 %v2315_v0  ;;  %v272_v41 = vld [vmem:[%s3231_s3 + $0x140] sm:$0xff]  ;;  %v271_v42 = vld [vmem:[%s3231_s3 + $0x138] sm:$0xff]  ;;  %v270_v43 = vld [vmem:[%s3231_s3 + $0x130] sm:$0xff] }
   0xe   :  { %2062 = vmatpush3.msra.mxu0 %v19_v9  ;;  %v269_v44 = vld [vmem:[%s3231_s3 + $0x128] sm:$0xff]  ;;  %v268_v45 = vld [vmem:[%s3231_s3 + $0x120] sm:$0xff]  ;;  %v267_v46 = vld [vmem:[%s3231_s3 + $0x118] sm:$0xff] }
   0xf   :  { %2063 = vmatprep.subr.mxu0 %v2315_v0  ;;  %v266_v47 = vld [vmem:[%s3231_s3 + $0x110] sm:$0xff]  ;;  %v265_v48 = vld [vmem:[%s3231_s3 + $0x108] sm:$0xff]  ;;  %v264_v49 = vld [vmem:[%s3231_s3 + $0x100] sm:$0xff] }
  0x10   :  { %2064 = vmatpush3.msra.mxu0 %v18_v10  ;;  %v263_v50 = vld [vmem:[%s3231_s3 + $0xf8] sm:$0xff]  ;;  %v262_v51 = vld [vmem:[%s3231_s3 + $0xf0] sm:$0xff]  ;;  %v190_v52 = vld [vmem:[%s3233_s1] sm:$0xff] }
  0x11   :  { %2066 = vmatmul.mubr.msk.f32.vlgmr.msra.gmra.mxu0 %vm31_vm1, %v17_v11  ;;  %2079 = vmatprep.subr.mxu0 %v2315_v0  ;;  %v193_v53 = vld [vmem:[%s3233_s1 + $0x18] sm:$0xff]  ;;  %v192_v54 = vld [vmem:[%s3233_s1 + $0x10] sm:$0xff]  ;;  %v195_v55 = vld [vmem:[%s3233_s1 + $0x28] sm:$0xff] }
  0x12   :  { %2093 = vmatprep.mubr.msk.f32.mxu0 %vm2316_vm0, %v2315_v0  ;;  %v194_v56 = vld [vmem:[%s3233_s1 + $0x20] sm:$0xff]  ;;  %v197_v57 = vld [vmem:[%s3233_s1 + $0x38] sm:$0xff]  ;;  %v196_v58 = vld [vmem:[%s3233_s1 + $0x30] sm:$0xff] }
  0x13   :  { %v199_v59 = vld [vmem:[%s3233_s1 + $0x48] sm:$0xff]  ;;  %v198_v60 = vld [vmem:[%s3233_s1 + $0x40] sm:$0xff]  ;;  %v201_v61 = vld [vmem:[%s3233_s1 + $0x58] sm:$0xff] }
  0x14   :  { %v200_v62 = vld [vmem:[%s3233_s1 + $0x50] sm:$0xff]  ;;  %v203_v63 = vld [vmem:[%s3233_s1 + $0x68] sm:$0xff]  ;;  %v202_v1 = vld [vmem:[%s3233_s1 + $0x60] sm:$0xff] }
  0x15   :  { %v205_v2 = vld [vmem:[%s3233_s1 + $0x78] sm:$0xff]  ;;  %v204_v3 = vld [vmem:[%s3233_s1 + $0x70] sm:$0xff]  ;;  %v207_v4 = vld [vmem:[%s3233_s1 + $0x88] sm:$0xff] }
  0x16   :  { %v206_v5 = vld [vmem:[%s3233_s1 + $0x80] sm:$0xff]  ;;  %v209_v6 = vld [vmem:[%s3233_s1 + $0x98] sm:$0xff]  ;;  %v208_v7 = vld [vmem:[%s3233_s1 + $0x90] sm:$0xff] }
  0x17   :  { %v211_v8 = vld [vmem:[%s3233_s1 + $0xa8] sm:$0xff]  ;;  %v210_v9 = vld [vmem:[%s3233_s1 + $0xa0] sm:$0xff]  ;;  %v213_v10 = vld [vmem:[%s3233_s1 + $0xb8] sm:$0xff] }
  0x18   :  { %v212_v11 = vld [vmem:[%s3233_s1 + $0xb0] sm:$0xff]  ;;  %v215_v12 = vld [vmem:[%s3233_s1 + $0xc8] sm:$0xff]  ;;  %v214_v13 = vld [vmem:[%s3233_s1 + $0xc0] sm:$0xff] }
  0xd1   :  { %v101_v15 = vpop.f32.mrf.mxu0 }
  0xd2   :  { %v102_v16 = vadd.f32 %v1875_v14, %v101_v15  ;;  %v217_v14 = vld [vmem:[%s3233_s1 + $0xd8] sm:$0xff]  ;;  %v216_v15 = vld [vmem:[%s3233_s1 + $0xd0] sm:$0xff] }
  0xd3   :  { %v2067_v17 = vpop.f32.mrf.mxu0 }
  0xd4   :  { %v105_v18 = vmax.f32 %v102_v16, 0.0  ;;  %v219_v16 = vld [vmem:[%s3233_s1 + $0xe8] sm:$0xff]  ;;  %v218_v17 = vld [vmem:[%s3233_s1 + $0xe0] sm:$0xff] }
  0xd6   :  { %2077 = vmatmul.mubr.msk.f32.vlgmr.msra.gmra.mxu1 %vm115_vm2, %v105_v18  ;;  %v221_v18 = vld [vmem:[%s3233_s1 + $0xf8] sm:$0xff] }
  0xd7   :  { %368 = vmatpush1.msra.mxu1 %v261_v19  ;;  %1880 = vmatprep.mubr.msk.f32.mxu1 %vm278_vm3, %v191_v20  ;;  %v220_v19 = vld [vmem:[%s3233_s1 + $0xf0] sm:$0xff]  ;;  %v223_v20 = vld [vmem:[%s3233_s1 + $0x108] sm:$0xff] }
  0xd8   :  { %369 = vmatprep.subr.mxu1 %v2315_v0 }
  0xd9   :  { %370 = vmatpush1.msra.mxu1 %v260_v21  ;;  %v222_v21 = vld [vmem:[%s3233_s1 + $0x100] sm:$0xff] }
  0xda   :  { %371 = vmatprep.subr.mxu1 %v2315_v0 }
  0xdb   :  { %372 = vmatpush1.msra.mxu1 %v259_v22  ;;  %v225_v22 = vld [vmem:[%s3233_s1 + $0x118] sm:$0xff] }
  0xdc   :  { %373 = vmatprep.subr.mxu1 %v2315_v0 }
  0xdd   :  { %374 = vmatpush1.msra.mxu1 %v258_v23  ;;  %v224_v23 = vld [vmem:[%s3233_s1 + $0x110] sm:$0xff] }
  0xde   :  { %375 = vmatprep.subr.mxu1 %v2315_v0 }
  0xdf   :  { %376 = vmatpush1.msra.mxu1 %v257_v24  ;;  %v227_v24 = vld [vmem:[%s3233_s1 + $0x128] sm:$0xff] }
  0xe0   :  { %377 = vmatprep.subr.mxu1 %v2315_v0 }
  0xe1   :  { %378 = vmatpush1.msra.mxu1 %v256_v25  ;;  %v226_v25 = vld [vmem:[%s3233_s1 + $0x120] sm:$0xff] }
  0xe2   :  { %379 = vmatprep.subr.mxu1 %v2315_v0 }
  0xe3   :  { %380 = vmatpush1.msra.mxu1 %v255_v26  ;;  %v229_v26 = vld [vmem:[%s3233_s1 + $0x138] sm:$0xff] }
  0xe4   :  { %381 = vmatprep.subr.mxu1 %v2315_v0 }
  0xe5   :  { %382 = vmatpush1.msra.mxu1 %v254_v27  ;;  %v228_v27 = vld [vmem:[%s3233_s1 + $0x130] sm:$0xff] }
  0xe6   :  { %383 = vmatprep.subr.mxu1 %v2315_v0 }
  0xe7   :  { %384 = vmatpush1.msra.mxu1 %v253_v28  ;;  %v231_v28 = vld [vmem:[%s3233_s1 + $0x148] sm:$0xff] }
  0xe8   :  { %385 = vmatprep.subr.mxu1 %v2315_v0 }
  0xe9   :  { %386 = vmatpush1.msra.mxu1 %v252_v29  ;;  %v230_v29 = vld [vmem:[%s3233_s1 + $0x140] sm:$0xff] }
  0xea   :  { %387 = vmatprep.subr.mxu1 %v2315_v0 }
  0xeb   :  { %388 = vmatpush1.msra.mxu1 %v251_v30  ;;  %v233_v30 = vld [vmem:[%s3233_s1 + $0x158] sm:$0xff] }
  0xec   :  { %389 = vmatprep.subr.mxu1 %v2315_v0 }
  0xed   :  { %390 = vmatpush1.msra.mxu1 %v250_v31  ;;  %v232_v31 = vld [vmem:[%s3233_s1 + $0x150] sm:$0xff] }
  0xee   :  { %391 = vmatprep.subr.mxu1 %v2315_v0 }
  0xef   :  { %392 = vmatpush1.msra.mxu1 %v249_v32  ;;  %v235_v32 = vld [vmem:[%s3233_s1 + $0x168] sm:$0xff] }
  0xf0   :  { %393 = vmatprep.subr.mxu1 %v2315_v0 }
  0xf1   :  { %394 = vmatpush1.msra.mxu1 %v248_v33  ;;  %v234_v33 = vld [vmem:[%s3233_s1 + $0x160] sm:$0xff] }
  0xf2   :  { %395 = vmatprep.subr.mxu1 %v2315_v0 }
  0xf3   :  { %396 = vmatpush1.msra.mxu1 %v247_v34  ;;  %v237_v34 = vld [vmem:[%s3233_s1 + $0x178] sm:$0xff] }
  0xf4   :  { %397 = vmatprep.subr.mxu1 %v2315_v0 }
  0xf5   :  { %398 = vmatpush1.msra.mxu1 %v246_v35  ;;  %v236_v35 = vld [vmem:[%s3233_s1 + $0x170] sm:$0xff] }
  0xf6   :  { %399 = vmatprep.subr.mxu1 %v2315_v0 }
  0xf7   :  { %1879 = vmatpush2.msk.msra.mxu1 %vm363_vm4, %v277_v36  ;;  %v239_v36 = vld [vmem:[%s3233_s1 + $0x188] sm:$0xff] }
  0xf8   :  { %401 = vmatprep.subr.mxu1 %v2315_v0 }
  0xf9   :  { %402 = vmatpush2.msra.mxu1 %v276_v37  ;;  %v238_v37 = vld [vmem:[%s3233_s1 + $0x180] sm:$0xff] }
  0xfa   :  { %403 = vmatprep.subr.mxu1 %v2315_v0 }
  0xfb   :  { %404 = vmatpush2.msra.mxu1 %v275_v38  ;;  %v241_v38 = vld [vmem:[%s3233_s1 + $0x198] sm:$0xff] }
  0xfc   :  { %405 = vmatprep.subr.mxu1 %v2315_v0 }
  0xfd   :  { %406 = vmatpush2.msra.mxu1 %v274_v39  ;;  %v240_v39 = vld [vmem:[%s3233_s1 + $0x190] sm:$0xff] }
  0xfe   :  { %407 = vmatprep.subr.mxu1 %v2315_v0 }
  0xff   :  { %408 = vmatpush2.msra.mxu1 %v273_v40  ;;  %v243_v40 = vld [vmem:[%s3233_s1 + $0x1a8] sm:$0xff] }
 0x100   :  { %409 = vmatprep.subr.mxu1 %v2315_v0 }
 0x101   :  { %410 = vmatpush2.msra.mxu1 %v272_v41  ;;  %v242_v41 = vld [vmem:[%s3233_s1 + $0x1a0] sm:$0xff] }
 0x102   :  { %411 = vmatprep.subr.mxu1 %v2315_v0 }
 0x103   :  { %412 = vmatpush2.msra.mxu1 %v271_v42  ;;  %v245_v42 = vld [vmem:[%s3233_s1 + $0x1b8] sm:$0xff] }
 0x104   :  { %413 = vmatprep.subr.mxu1 %v2315_v0 }
 0x105   :  { %414 = vmatpush2.msra.mxu1 %v270_v43  ;;  %v244_v43 = vld [vmem:[%s3233_s1 + $0x1b0] sm:$0xff] }
 0x106   :  { %415 = vmatprep.subr.mxu1 %v2315_v0 }
 0x107   :  { %416 = vmatpush2.msra.mxu1 %v269_v44 }
 0x108   :  { %417 = vmatprep.subr.mxu1 %v2315_v0 }
 0x109   :  { %418 = vmatpush2.msra.mxu1 %v268_v45 }
 0x10a   :  { %419 = vmatprep.subr.mxu1 %v2315_v0 }
 0x10b   :  { %420 = vmatpush2.msra.mxu1 %v267_v46  ;;  %v625_v46 = vld [vmem:[%s3231_s3 + $0x1e0] sm:$0xff] }
 0x10c   :  { %421 = vmatprep.subr.mxu1 %v2315_v0  ;;  %2080 = vmatpush3.msra.mxu0 %v625_v46 }
 0x10d   :  { %422 = vmatpush2.msra.mxu1 %v266_v47  ;;  %2081 = vmatprep.subr.mxu0 %v2315_v0  ;;  %v624_v47 = vld [vmem:[%s3231_s3 + $0x1d8] sm:$0xff] }
 0x10e   :  { %423 = vmatprep.subr.mxu1 %v2315_v0  ;;  %2082 = vmatpush3.msra.mxu0 %v624_v47 }
 0x10f   :  { %424 = vmatpush2.msra.mxu1 %v265_v48  ;;  %2083 = vmatprep.subr.mxu0 %v2315_v0  ;;  %v623_v48 = vld [vmem:[%s3231_s3 + $0x1d0] sm:$0xff] }
 0x110   :  { %425 = vmatprep.subr.mxu1 %v2315_v0  ;;  %2084 = vmatpush3.msra.mxu0 %v623_v48  ;;  %v2789_v48 = vld [vmem:[%s3231_s3 + $0x170] ss:$0 sm:$0xff] }
 0x111   :  { %426 = vmatpush2.msra.mxu1 %v264_v49  ;;  %2085 = vmatprep.subr.mxu0 %v2315_v0  ;;  %v622_v49 = vld [vmem:[%s3231_s3 + $0x1c8] sm:$0xff] }
 0x112   :  { %427 = vmatprep.subr.mxu1 %v2315_v0  ;;  %2086 = vmatpush3.msra.mxu0 %v622_v49 }
 0x113   :  { %428 = vmatpush2.msra.mxu1 %v263_v50  ;;  %2087 = vmatprep.subr.mxu0 %v2315_v0  ;;  %v621_v50 = vld [vmem:[%s3231_s3 + $0x1c0] sm:$0xff] }
 0x114   :  { %429 = vmatprep.subr.mxu1 %v2315_v0  ;;  %2088 = vmatpush3.msra.mxu0 %v621_v50 }
 0x115   :  { %430 = vmatpush2.msra.mxu1 %v262_v51  ;;  %2089 = vmatprep.subr.mxu0 %v2315_v0  ;;  %v620_v51 = vld [vmem:[%s3231_s3 + $0x1b8] sm:$0xff] }
 0x116   :  { %432 = vmatmul.mubr.f32.vlgmr.msra.gmra.mxu1 %v190_v52  ;;  %2283 = vmatprep.subr.mxu1 %v2315_v0  ;;  %v619_v52 = vld [vmem:[%s3231_s3 + $0x1b0] sm:$0xff] }
 0x117   :  { %1881 = vmatprep.mubr.msk.f32.mxu1 %vm278_vm3, %v193_v53  ;;  %2090 = vmatpush3.msra.mxu0 %v620_v51 }
 0x118   :  { %2091 = vmatprep.subr.mxu0 %v2315_v0 }
 0x119   :  { %2092 = vmatpush3.msra.mxu0 %v619_v52 }
 0x11a   :  { %437 = vmatmul.mubr.f32.gmra.mxu1 %v192_v54  ;;  %2096 = vmatprep.subr.mxu0 %v2315_v0 }
 0x11b   :  { %1882 = vmatprep.mubr.msk.f32.mxu1 %vm278_vm3, %v195_v55 }
 0x11e   :  { %442 = vmatmul.mubr.f32.gmra.mxu1 %v194_v56 }
 0x11f   :  { %1883 = vmatprep.mubr.msk.f32.mxu1 %vm278_vm3, %v197_v57 }
 0x122   :  { %447 = vmatmul.mubr.f32.gmra.mxu1 %v196_v58 }
 0x123   :  { %1884 = vmatprep.mubr.msk.f32.mxu1 %vm278_vm3, %v199_v59 }
 0x126   :  { %452 = vmatmul.mubr.f32.gmra.mxu1 %v198_v60 }
 0x127   :  { %1885 = vmatprep.mubr.msk.f32.mxu1 %vm278_vm3, %v201_v61 }
 0x12a   :  { %457 = vmatmul.mubr.f32.gmra.mxu1 %v200_v62 }
 0x12b   :  { %1886 = vmatprep.mubr.msk.f32.mxu1 %vm278_vm3, %v203_v63 }
 0x12e   :  { %462 = vmatmul.mubr.f32.gmra.mxu1 %v202_v1 }
 0x12f   :  { %1887 = vmatprep.mubr.msk.f32.mxu1 %vm278_vm3, %v205_v2 }
 0x132   :  { %467 = vmatmul.mubr.f32.gmra.mxu1 %v204_v3 }
 0x133   :  { %1888 = vmatprep.mubr.msk.f32.mxu1 %vm278_vm3, %v207_v4 }
 0x136   :  { %472 = vmatmul.mubr.f32.gmra.mxu1 %v206_v5 }
 0x137   :  { %1889 = vmatprep.mubr.msk.f32.mxu1 %vm278_vm3, %v209_v6 }
 0x13a   :  { %477 = vmatmul.mubr.f32.gmra.mxu1 %v208_v7 }
 0x13b   :  { %1890 = vmatprep.mubr.msk.f32.mxu1 %vm278_vm3, %v211_v8 }
 0x13e   :  { %482 = vmatmul.mubr.f32.gmra.mxu1 %v210_v9 }
 0x13f   :  { %1891 = vmatprep.mubr.msk.f32.mxu1 %vm278_vm3, %v213_v10 }
 0x142   :  { %487 = vmatmul.mubr.f32.gmra.mxu1 %v212_v11 }
 0x143   :  { %1892 = vmatprep.mubr.msk.f32.mxu1 %vm278_vm3, %v215_v12 }
 0x146   :  { %492 = vmatmul.mubr.f32.gmra.mxu1 %v214_v13 }
 0x147   :  { %1893 = vmatprep.mubr.msk.f32.mxu1 %vm278_vm3, %v217_v14 }
 0x14a   :  { %497 = vmatmul.mubr.f32.gmra.mxu1 %v216_v15 }
 0x14b   :  { %1894 = vmatprep.mubr.msk.f32.mxu1 %vm278_vm3, %v219_v16 }
 0x14e   :  { %502 = vmatmul.mubr.f32.gmra.mxu1 %v218_v17 }
 0x14f   :  { %1895 = vmatprep.mubr.msk.f32.mxu1 %vm278_vm3, %v221_v18 }
 0x152   :  { %507 = vmatmul.mubr.f32.gmra.mxu1 %v220_v19 }
 0x153   :  { %1896 = vmatprep.mubr.msk.f32.mxu1 %vm278_vm3, %v223_v20 }
 0x156   :  { %512 = vmatmul.mubr.f32.gmra.mxu1 %v222_v21 }
 0x157   :  { %1897 = vmatprep.mubr.msk.f32.mxu1 %vm278_vm3, %v225_v22 }
 0x15a   :  { %517 = vmatmul.mubr.f32.gmra.mxu1 %v224_v23 }
 0x15b   :  { %1898 = vmatprep.mubr.msk.f32.mxu1 %vm278_vm3, %v227_v24 }
 0x15e   :  { %522 = vmatmul.mubr.f32.gmra.mxu1 %v226_v25 }
 0x15f   :  { %1899 = vmatprep.mubr.msk.f32.mxu1 %vm278_vm3, %v229_v26 }
 0x162   :  { %527 = vmatmul.mubr.f32.gmra.mxu1 %v228_v27 }
 0x163   :  { %1900 = vmatprep.mubr.msk.f32.mxu1 %vm278_vm3, %v231_v28 }
 0x166   :  { %532 = vmatmul.mubr.f32.gmra.mxu1 %v230_v29 }
 0x167   :  { %1901 = vmatprep.mubr.msk.f32.mxu1 %vm278_vm3, %v233_v30 }
 0x16a   :  { %537 = vmatmul.mubr.f32.gmra.mxu1 %v232_v31 }
 0x16b   :  { %1902 = vmatprep.mubr.msk.f32.mxu1 %vm278_vm3, %v235_v32 }
 0x16e   :  { %542 = vmatmul.mubr.f32.gmra.mxu1 %v234_v33 }
 0x16f   :  { %1903 = vmatprep.mubr.msk.f32.mxu1 %vm278_vm3, %v237_v34 }
 0x172   :  { %547 = vmatmul.mubr.f32.gmra.mxu1 %v236_v35 }
 0x173   :  { %1904 = vmatprep.mubr.msk.f32.mxu1 %vm278_vm3, %v239_v36 }
 0x176   :  { %552 = vmatmul.mubr.f32.gmra.mxu1 %v238_v37 }
 0x177   :  { %1905 = vmatprep.mubr.msk.f32.mxu1 %vm278_vm3, %v241_v38 }
 0x17a   :  { %557 = vmatmul.mubr.f32.gmra.mxu1 %v240_v39 }
 0x17b   :  { %1906 = vmatprep.mubr.msk.f32.mxu1 %vm278_vm3, %v243_v40 }
 0x17e   :  { %562 = vmatmul.mubr.f32.gmra.mxu1 %v242_v41 }
 0x17f   :  { %1907 = vmatprep.mubr.msk.f32.mxu1 %vm278_vm3, %v245_v42 }
 0x182   :  { %567 = vmatmul.mubr.f32.gmra.mxu1 %v244_v43 }
 0x183   :  { %2299 = vmatprep.mubr.msk.f32.mxu1 %vm2316_vm0, %v2315_v0 }
 0x196   :  { %v2735_v44 = vpop.f32.mrf.mxu1 }
 0x198   :  { %v2078_v45 = vpop.f32.mrf.mxu1 }
 0x1d6   :  { %v2765_v53 = vpop.f32.mrf.mxu1 }
 0x1d8   :  { %v435_v54 = vpop.f32.mrf.mxu1 }
 0x1da   :  { %v438_v55 = vpop.f32.mrf.mxu1 }
 0x1dc   :  { %v440_v56 = vpop.f32.mrf.mxu1 }
 0x1de   :  { %v2767_v57 = vpop.f32.mrf.mxu1 }
 0x1e0   :  { %v445_v58 = vpop.f32.mrf.mxu1 }
 0x1e2   :  { %v2769_v59 = vpop.f32.mrf.mxu1 }
 0x1e4   :  { %v450_v60 = vpop.f32.mrf.mxu1 }
 0x1e5   :  { %v616_v60 = vld [vmem:[%s3231_s3 + $0x198] sm:$0xff] }
 0x1e6   :  { %v453_v61 = vpop.f32.mrf.mxu1 }
 0x1e8   :  { %v455_v62 = vpop.f32.mrf.mxu1 }
 0x1ea   :  { %v458_v63 = vpop.f32.mrf.mxu1 }
 0x1ec   :  { %v460_v1 = vpop.f32.mrf.mxu1 }
 0x1ee   :  { %v463_v2 = vpop.f32.mrf.mxu1 }
 0x1f0   :  { %v465_v3 = vpop.f32.mrf.mxu1 }
 0x1f2   :  { %v468_v4 = vpop.f32.mrf.mxu1 }
 0x1f3   :  { %v572_v5 = vmax.f32 %v2765_v53, %v468_v4  ;;  %v618_v53 = vld [vmem:[%s3231_s3 + $0x1a8] sm:$0xff] }
 0x1f4   :  { %v470_v6 = vpop.f32.mrf.mxu1 }
 0x1f6   :  { %v473_v7 = vpop.f32.mrf.mxu1 }
 0x1f7   :  { %v573_v42 = vmax.f32 %v438_v55, %v473_v7  ;;  %v617_v55 = vld [vmem:[%s3231_s3 + $0x1a0] sm:$0xff] }
 0x1f8   :  { %v475_v8 = vpop.f32.mrf.mxu1 }
 0x1f9   :  { %v612_v8 = vld [vmem:[%s3231_s3 + $0x178] sm:$0xff] }
 0x1fa   :  { %v2772_v9 = vpop.f32.mrf.mxu1 }
 0x1fb   :  { %v574_v10 = vmax.f32 %v2767_v57, %v2772_v9  ;;  %v628_v57 = vld [vmem:[%s3231_s3 + $0x1f8] sm:$0xff] }
 0x1fc   :  { %v480_v11 = vpop.f32.mrf.mxu1 }
 0x1fe   :  { %v2776_v12 = vpop.f32.mrf.mxu1 }
 0x1ff   :  { %v575_v13 = vmax.f32 %v2769_v59, %v2776_v12  ;;  %v635_v59 = vld [vmem:[%s3231_s3 + $0x230] sm:$0xff] }
 0x200   :  { %v485_v14 = vpop.f32.mrf.mxu1 }
 0x202   :  { %v488_v15 = vpop.f32.mrf.mxu1 }
 0x203   :  { %v576_v16 = vmax.f32 %v453_v61, %v488_v15 }
 0x204   :  { %v490_v17 = vpop.f32.mrf.mxu1 }
 0x206   :  { %v493_v18 = vpop.f32.mrf.mxu1 }
 0x207   :  { %v577_v19 = vmax.f32 %v458_v63, %v493_v18  ;;  %v615_v63 = vld [vmem:[%s3231_s3 + $0x190] sm:$0xff] }
 0x208   :  { %v495_v20 = vpop.f32.mrf.mxu1 }
 0x20a   :  { %v498_v21 = vpop.f32.mrf.mxu1 }
 0x20b   :  { %v578_v22 = vmax.f32 %v463_v2, %v498_v21  ;;  %v614_v2 = vld [vmem:[%s3231_s3 + $0x188] sm:$0xff] }
 0x20c   :  { %v500_v23 = vpop.f32.mrf.mxu1 }
 0x20d   :  { %v630_v23 = vld [vmem:[%s3231_s3 + $0x208] sm:$0xff] }
 0x20e   :  { %v503_v24 = vpop.f32.mrf.mxu1 }
 0x20f   :  { %v579_v58 = vmax.f32 %v572_v5, %v503_v24  ;;  %v613_v5 = vld [vmem:[%s3231_s3 + $0x180] sm:$0xff] }
 0x210   :  { %v505_v25 = vpop.f32.mrf.mxu1 }
 0x211   :  { %v629_v25 = vld [vmem:[%s3231_s3 + $0x200] sm:$0xff] }
 0x212   :  { %v508_v26 = vpop.f32.mrf.mxu1 }
 0x213   :  { %v580_v45 = vmax.f32 %v573_v42, %v508_v26  ;;  %v626_v26 = vld [vmem:[%s3231_s3 + $0x1e8] sm:$0xff] }
 0x214   :  { %v510_v27 = vpop.f32.mrf.mxu1  ;;  %v642_v42 = vld [vmem:[%s3231_s3 + $0x268] sm:$0xff] }
 0x216   :  { %v2780_v28 = vpop.f32.mrf.mxu1 }
 0x217   :  { %v581_v21 = vmax.f32 %v574_v10, %v2780_v28  ;;  %v627_v10 = vld [vmem:[%s3231_s3 + $0x1f0] sm:$0xff] }
 0x218   :  { %v515_v29 = vpop.f32.mrf.mxu1  ;;  %v639_v28 = vld [vmem:[%s3231_s3 + $0x250] sm:$0xff] }
 0x219   :  { %v638_v29 = vld [vmem:[%s3231_s3 + $0x248] sm:$0xff] }
 0x21a   :  { %v2782_v30 = vpop.f32.mrf.mxu1 }
 0x21c   :  { %v520_v31 = vpop.f32.mrf.mxu1 }
 0x21d   :  { %v582_v31 = vmax.f32 %v575_v13, %v2782_v30  ;;  %v634_v13 = vld [vmem:[%s3231_s3 + $0x228] sm:$0xff]  ;;  %v633_v30 = vld [vmem:[%s3231_s3 + $0x220] sm:$0xff] }
 0x21e   :  { %v523_v32 = vpop.f32.mrf.mxu1 }
 0x21f   :  { %v2784_v33 = vmax.f32 %v576_v16, %v523_v32  ;;  %v632_v16 = vld [vmem:[%s3231_s3 + $0x218] sm:$0xff]  ;;  %v637_v32 = vld [vmem:[%s3231_s3 + $0x240] sm:$0xff] }
 0x220   :  { %v525_v34 = vpop.f32.mrf.mxu1 }
 0x222   :  { %v528_v35 = vpop.f32.mrf.mxu1 }
 0x223   :  { %v584_v36 = vmax.f32 %v577_v19, %v528_v35  ;;  %v631_v19 = vld [vmem:[%s3231_s3 + $0x210] sm:$0xff]  ;;  %v636_v35 = vld [vmem:[%s3231_s3 + $0x238] sm:$0xff] }
 0x224   :  { %v530_v37 = vpop.f32.mrf.mxu1 }
 0x225   :  { %v646_v37 = vld [vmem:[%s3231_s3 + $0x288] sm:$0xff] }
 0x226   :  { %v533_v38 = vpop.f32.mrf.mxu1 }
 0x227   :  { %v585_v39 = vmax.f32 %v578_v22, %v533_v38  ;;  %v645_v38 = vld [vmem:[%s3231_s3 + $0x280] sm:$0xff] }
 0x228   :  { %v535_v40 = vpop.f32.mrf.mxu1 }
 0x22a   :  { %v538_v41 = vpop.f32.mrf.mxu1 }
 0x22b   :  { %v586_v62 = vmax.f32 %v579_v58, %v538_v41  ;;  %v643_v41 = vld [vmem:[%s3231_s3 + $0x270] sm:$0xff]  ;;  %v658_v58 = vld [vmem:[%s3231_s3 + $0x2e8] sm:$0xff] }
 0x22c   :  { %v540_v43 = vpop.f32.mrf.mxu1 }
 0x22d   :  { %v598_v4 = vadd.f32 %v2789_v48, %v586_v62  ;;  %v655_v62 = vld [vmem:[%s3231_s3 + $0x2d0] sm:$0xff] }
 0x22e   :  { %v543_v46 = vpop.f32.mrf.mxu1 }
 0x22f   :  { %v587_v47 = vmax.f32 %v580_v45, %v543_v46  ;;  %v605_v14 = vmax.f32 %v598_v4, 0.0  ;;  %v640_v45 = vld [vmem:[%s3231_s3 + $0x258] sm:$0xff]  ;;  %v1190_v4 = vld [vmem:[%s3231_s3 + $0x330] sm:$0xff] }
 0x230   :  { %v545_v49 = vpop.f32.mrf.mxu1 }
 0x231   :  { %v599_v50 = vadd.f32 %v2789_v48, %v587_v47  ;;  %v653_v47 = vld [vmem:[%s3231_s3 + $0x2c0] sm:$0xff]  ;;  %v651_v49 = vld [vmem:[%s3231_s3 + $0x2b0] sm:$0xff] }
 0x232   :  { %v548_v51 = vpop.f32.mrf.mxu1 }
 0x233   :  { %v606_v52 = vmax.f32 %v599_v50, 0.0  ;;  %v588_v24 = vmax.f32 %v581_v21, %v548_v51  ;;  %v650_v50 = vld [vmem:[%s3231_s3 + $0x2a8] sm:$0xff]  ;;  %v649_v51 = vld [vmem:[%s3231_s3 + $0x2a0] sm:$0xff] }
 0x234   :  { %v550_v54 = vpop.f32.mrf.mxu1 }
 0x235   :  { %2094 = vmatmul.mubr.msk.f32.vlgmr.msra.gmra.mxu0 %vm661_vm5, %v606_v52  ;;  %v600_v9 = vadd.f32 %v2789_v48, %v588_v24  ;;  %v648_v52 = vld [vmem:[%s3231_s3 + $0x298] sm:$0xff] }
 0x236   :  { %2097 = vmatpush3.msra.mxu0 %v618_v53  ;;  %v2799_v56 = vpop.f32.mrf.mxu1  ;;  %2110 = vmatprep.mubr.msk.f32.mxu0 %vm2316_vm0, %v2315_v0  ;;  %v647_v53 = vld [vmem:[%s3231_s3 + $0x290] sm:$0xff] }
 0x237   :  { %2098 = vmatprep.subr.mxu0 %v2315_v0  ;;  %v607_v27 = vmax.f32 %v600_v9, 0.0  ;;  %v589_v34 = vmax.f32 %v582_v31, %v2799_v56  ;;  %v659_v56 = vld [vmem:[%s3231_s3 + $0x2f0] sm:$0xff]  ;;  %v1188_v31 = vld [vmem:[%s3231_s3 + $0x320] sm:$0xff] }
 0x238   :  { %2099 = vmatpush3.msra.mxu0 %v617_v55  ;;  %v555_v61 = vpop.f32.mrf.mxu1  ;;  %v660_v55 = vld [vmem:[%s3231_s3 + $0x2f8] sm:$0xff] }
 0x239   :  { %2100 = vmatprep.subr.mxu0 %v2315_v0  ;;  %v601_v12 = vadd.f32 %v2789_v48, %v589_v34  ;;  %v656_v61 = vld [vmem:[%s3231_s3 + $0x2d8] sm:$0xff] }
 0x23a   :  { %2101 = vmatpush3.msra.mxu0 %v616_v60  ;;  %v2811_v1 = vpop.f32.mrf.mxu1  ;;  %v657_v60 = vld [vmem:[%s3231_s3 + $0x2e0] sm:$0xff]  ;;  %v1187_v34 = vld [vmem:[%s3231_s3 + $0x318] sm:$0xff] }
 0x23b   :  { %2102 = vmatprep.subr.mxu0 %v2315_v0  ;;  %v590_v40 = vmax.f32 %v2784_v33, %v2811_v1  ;;  %v641_v33 = vld [vmem:[%s3231_s3 + $0x260] sm:$0xff] }
 0x23c   :  { %2103 = vmatpush3.msra.mxu0 %v615_v63  ;;  %v560_v3 = vpop.f32.mrf.mxu1  ;;  %v654_v63 = vld [vmem:[%s3231_s3 + $0x2c8] sm:$0xff] }
 0x23d   :  { %2104 = vmatprep.subr.mxu0 %v2315_v0  ;;  %v602_v43 = vadd.f32 %v2789_v48, %v590_v40  ;;  %v1191_v3 = vld [vmem:[%s3231_s3 + $0x338] sm:$0xff] }
 0x23e   :  { %2105 = vmatpush3.msra.mxu0 %v614_v2  ;;  %v563_v6 = vpop.f32.mrf.mxu1  ;;  %v1192_v2 = vld [vmem:[%s3231_s3 + $0x340] sm:$0xff] }
 0x23f   :  { %v591_v7 = vmax.f32 %v584_v36, %v563_v6  ;;  %2106 = vmatprep.subr.mxu0 %v2315_v0  ;;  %v608_v36 = vmax.f32 %v601_v12, 0.0  ;;  %v609_v46 = vmax.f32 %v602_v43, 0.0  ;;  %v1185_v12 = vld [vmem:[%s3231_s3 + $0x308] sm:$0xff] }
 0x240   :  { %2107 = vmatpush3.msra.mxu0 %v613_v5  ;;  %v565_v11 = vpop.f32.mrf.mxu1  ;;  %v1189_v5 = vld [vmem:[%s3231_s3 + $0x328] sm:$0xff] }
 0x241   :  { %v2827_v15 = vadd.f32 %v2789_v48, %v591_v7  ;;  %2108 = vmatprep.subr.mxu0 %v2315_v0 }
 0x242   :  { %2109 = vmatpush3.msra.mxu0 %v612_v8  ;;  %v568_v17 = vpop.f32.mrf.mxu1 }
 0x243   :  { %v592_v18 = vmax.f32 %v585_v39, %v568_v17  ;;  %2111 = vmatmul.mubr.msk.f32.vlgmr.msra.gmra.mxu0 %vm661_vm5, %v605_v14  ;;  %2113 = vmatprep.subr.mxu0 %v2315_v0  ;;  %v644_v39 = vld [vmem:[%s3231_s3 + $0x278] sm:$0xff]  ;;  %v610_v54 = vmax.f32 %v2827_v15, 0.0 }
 0x244   :  { %2114 = vmatpush3.msra.mxu0 %v632_v16  ;;  %2127 = vmatprep.mubr.msk.f32.mxu0 %vm2316_vm0, %v2315_v0  ;;  %v570_v20 = vpop.f32.mrf.mxu1 }
 0x245   :  { %v2845_v22 = vadd.f32 %v2789_v48, %v592_v18  ;;  %2115 = vmatprep.subr.mxu0 %v2315_v0  ;;  %v652_v48 = vld [vmem:[%s3231_s3 + $0x2b8] sm:$0xff] }
 0x246   :  { %2116 = vmatpush3.msra.mxu0 %v631_v19 }
 0x247   :  { %2117 = vmatprep.subr.mxu0 %v2315_v0  ;;  %v611_v1 = vmax.f32 %v2845_v22, 0.0 }
 0x248   :  { %2118 = vmatpush3.msra.mxu0 %v630_v23 }
 0x249   :  { %2119 = vmatprep.subr.mxu0 %v2315_v0 }
 0x24a   :  { %2120 = vmatpush3.msra.mxu0 %v629_v25 }
 0x24b   :  { %2121 = vmatprep.subr.mxu0 %v2315_v0 }
 0x24c   :  { %2122 = vmatpush3.msra.mxu0 %v628_v57 }
 0x24d   :  { %2123 = vmatprep.subr.mxu0 %v2315_v0 }
 0x24e   :  { %2124 = vmatpush3.msra.mxu0 %v627_v10  ;;  %v1916_v10 = vld [vmem:[%s3231_s3 + $0x300] ss:$0 sm:$0xff] }
 0x24f   :  { %2125 = vmatprep.subr.mxu0 %v2315_v0 }
 0x250   :  { %2126 = vmatpush3.msra.mxu0 %v626_v26 }
 0x251   :  { %2128 = vmatmul.mubr.msk.f32.vlgmr.msra.gmra.mxu0 %vm661_vm5, %v607_v27  ;;  %2130 = vmatprep.subr.mxu0 %v2315_v0 }
 0x252   :  { %2131 = vmatpush3.msra.mxu0 %v639_v28  ;;  %2144 = vmatprep.mubr.msk.f32.mxu0 %vm2316_vm0, %v2315_v0 }
 0x253   :  { %2132 = vmatprep.subr.mxu0 %v2315_v0 }
 0x254   :  { %2133 = vmatpush3.msra.mxu0 %v638_v29 }
 0x255   :  { %2134 = vmatprep.subr.mxu0 %v2315_v0 }
 0x256   :  { %2135 = vmatpush3.msra.mxu0 %v637_v32  ;;  %v1877_v32 = vld [vmem:[%s3231_s3 + $0x68] ss:$0 sm:$0xff] }
 0x257   :  { %2136 = vmatprep.subr.mxu0 %v2315_v0 }
 0x258   :  { %2137 = vmatpush3.msra.mxu0 %v636_v35  ;;  %v186_v35 = vadd.f32 %v1877_v32, %v2735_v44  ;;  %v1349_v44 = vld [vmem:[%s3231_s3 + $0x368] sm:$0xff] }
 0x259   :  { %2138 = vmatprep.subr.mxu0 %v2315_v0 }
 0x25a   :  { %2139 = vmatpush3.msra.mxu0 %v635_v59  ;;  %v1186_v59 = vld [vmem:[%s3231_s3 + $0x310] sm:$0xff] }
 0x25b   :  { %2140 = vmatprep.subr.mxu0 %v2315_v0 }
 0x25c   :  { %2141 = vmatpush3.msra.mxu0 %v634_v13  ;;  %v3052_v13 = vmax.f32 %v186_v35, 0.0  ;;  %v1839_v35 = vld [vmem:[%s3234_s2] sm:$0xff] }
 0x25d   :  { %2142 = vmatprep.subr.mxu0 %v2315_v0  ;;  %vm1840_vm6 = vcmp.gt.f32.partialorder %v1839_v35, 0.0 }
 0x25e   :  { %2143 = vmatpush3.msra.mxu0 %v633_v30  ;;  %v1348_v30 = vld [vmem:[%s3231_s3 + $0x360] sm:$0xff] }
 0x25f   :  { %2145 = vmatmul.mubr.msk.f32.vlgmr.msra.gmra.mxu0 %vm661_vm5, %v608_v36  ;;  %2147 = vmatprep.subr.mxu0 %v2315_v0  ;;  %v1347_v36 = vld [vmem:[%s3231_s3 + $0x358] sm:$0xff] }
 0x260   :  { %2148 = vmatpush3.msra.mxu0 %v646_v37  ;;  %2161 = vmatprep.mubr.msk.f32.mxu0 %vm2316_vm0, %v2315_v0  ;;  %v1346_v37 = vld [vmem:[%s3231_s3 + $0x350] sm:$0xff] }
 0x261   :  { %2149 = vmatprep.subr.mxu0 %v2315_v0 }
 0x262   :  { %2150 = vmatpush3.msra.mxu0 %v645_v38 }
 0x263   :  { %2151 = vmatprep.subr.mxu0 %v2315_v0 }
 0x264   :  { %2152 = vmatpush3.msra.mxu0 %v644_v39 }
 0x265   :  { %2153 = vmatprep.subr.mxu0 %v2315_v0 }
 0x266   :  { %2154 = vmatpush3.msra.mxu0 %v643_v41  ;;  %v1919_v41 = vld [vmem:[%s3231_s3 + $0x348] ss:$0 sm:$0xff] }
 0x267   :  { %2155 = vmatprep.subr.mxu0 %v2315_v0 }
 0x268   :  { %2156 = vmatpush3.msra.mxu0 %v642_v42 }
 0x269   :  { %2157 = vmatprep.subr.mxu0 %v2315_v0 }
 0x26a   :  { %2158 = vmatpush3.msra.mxu0 %v641_v33 }
 0x26b   :  { %2159 = vmatprep.subr.mxu0 %v2315_v0 }
 0x26c   :  { %2160 = vmatpush3.msra.mxu0 %v640_v45 }
 0x26d   :  { %2162 = vmatmul.mubr.msk.f32.vlgmr.msra.gmra.mxu0 %vm661_vm5, %v609_v46  ;;  %2164 = vmatprep.subr.mxu0 %v2315_v0  ;;  %v1432_v46 = vld [vmem:[%s3231_s3 + $0x390] sm:$0xff] }
 0x26e   :  { %2165 = vmatpush3.msra.mxu0 %v653_v47  ;;  %2178 = vmatprep.mubr.msk.f32.mxu0 %vm2316_vm0, %v2315_v0  ;;  %v1431_v47 = vld [vmem:[%s3231_s3 + $0x388] sm:$0xff] }
 0x26f   :  { %2166 = vmatprep.subr.mxu0 %v2315_v0 }
 0x270   :  { %2167 = vmatpush3.msra.mxu0 %v652_v48  ;;  %v1430_v48 = vld [vmem:[%s3231_s3 + $0x380] sm:$0xff] }
 0x271   :  { %2168 = vmatprep.subr.mxu0 %v2315_v0 }
 0x272   :  { %2169 = vmatpush3.msra.mxu0 %v651_v49  ;;  %v1429_v49 = vld [vmem:[%s3231_s3 + $0x378] sm:$0xff] }
 0x273   :  { %2170 = vmatprep.subr.mxu0 %v2315_v0 }
 0x274   :  { %2171 = vmatpush3.msra.mxu0 %v650_v50  ;;  %v1920_v50 = vld [vmem:[%s3231_s3 + $0x370] ss:$0 sm:$0xff] }
 0x275   :  { %2172 = vmatprep.subr.mxu0 %v2315_v0 }
 0x276   :  { %2173 = vmatpush3.msra.mxu0 %v649_v51 }
 0x277   :  { %2174 = vmatprep.subr.mxu0 %v2315_v0 }
 0x278   :  { %2175 = vmatpush3.msra.mxu0 %v648_v52 }
 0x279   :  { %2176 = vmatprep.subr.mxu0 %v2315_v0 }
 0x27a   :  { %2177 = vmatpush3.msra.mxu0 %v647_v53 }
 0x27b   :  { %2179 = vmatmul.mubr.msk.f32.vlgmr.msra.gmra.mxu0 %vm661_vm5, %v610_v54  ;;  %2181 = vmatprep.subr.mxu0 %v2315_v0  ;;  %v1518_v54 = vld [vmem:[%s3231_s3 + $0x3d8] sm:$0xff] }
 0x27c   :  { %2182 = vmatpush3.msra.mxu0 %v660_v55  ;;  %2195 = vmatprep.mubr.msk.f32.mxu0 %vm2316_vm0, %v2315_v0 }
 0x27d   :  { %2183 = vmatprep.subr.mxu0 %v2315_v0 }
 0x27e   :  { %2184 = vmatpush3.msra.mxu0 %v659_v56  ;;  %v1517_v56 = vld [vmem:[%s3231_s3 + $0x3d0] sm:$0xff] }
 0x27f   :  { %2185 = vmatprep.subr.mxu0 %v2315_v0 }
 0x280   :  { %2186 = vmatpush3.msra.mxu0 %v658_v58  ;;  %v1516_v58 = vld [vmem:[%s3231_s3 + $0x3c8] sm:$0xff] }
 0x281   :  { %2187 = vmatprep.subr.mxu0 %v2315_v0 }
 0x282   :  { %2188 = vmatpush3.msra.mxu0 %v657_v60  ;;  %v1515_v60 = vld [vmem:[%s3231_s3 + $0x3c0] sm:$0xff] }
 0x283   :  { %2189 = vmatprep.subr.mxu0 %v2315_v0 }
 0x284   :  { %2190 = vmatpush3.msra.mxu0 %v656_v61  ;;  %v1514_v61 = vld [vmem:[%s3231_s3 + $0x3b8] sm:$0xff] }
 0x285   :  { %2191 = vmatprep.subr.mxu0 %v2315_v0 }
 0x286   :  { %2192 = vmatpush3.msra.mxu0 %v655_v62  ;;  %v1513_v62 = vld [vmem:[%s3231_s3 + $0x3b0] sm:$0xff] }
 0x287   :  { %2193 = vmatprep.subr.mxu0 %v2315_v0 }
 0x288   :  { %2194 = vmatpush3.msra.mxu0 %v654_v63  ;;  %v1512_v63 = vld [vmem:[%s3231_s3 + $0x3a8] sm:$0xff] }
 0x289   :  { %2196 = vmatmul.mubr.msk.f32.vlgmr.msra.gmra.mxu0 %vm661_vm5, %v611_v1  ;;  %2198 = vmatprep.subr.mxu0 %v2315_v0  ;;  %v1511_v1 = vld [vmem:[%s3231_s3 + $0x3a0] sm:$0xff] }
 0x28a   :  { %2206 = vmatprep.mubr.msk.f32.mxu0 %vm2316_vm0, %v2315_v0  ;;  %2199 = vmatpush3.msra.mxu0 %v1192_v2  ;;  %v1673_v2 = vld [vmem:[%s3231_s3 + $0x420] sm:$0xff] }
 0x28b   :  { %2200 = vmatprep.subr.mxu0 %v2315_v0 }
 0x28c   :  { %2201 = vmatpush3.msra.mxu0 %v1191_v3  ;;  %v1672_v3 = vld [vmem:[%s3231_s3 + $0x418] sm:$0xff] }
 0x28d   :  { %2202 = vmatprep.subr.mxu0 %v2315_v0 }
 0x28e   :  { %2203 = vmatpush3.msra.mxu0 %v1190_v4  ;;  %v1671_v4 = vld [vmem:[%s3231_s3 + $0x410] sm:$0xff] }
 0x28f   :  { %2204 = vmatprep.subr.mxu0 %v2315_v0 }
 0x290   :  { %2205 = vmatpush3.msra.mxu0 %v1189_v5  ;;  %v1670_v5 = vld [vmem:[%s3231_s3 + $0x408] sm:$0xff] }
 0x291   :  { %2209 = vmatprep.subr.mxu0 %v2315_v0 }
 0x2f5   :  { %v731_v6 = vpop.f32.mrf.mxu0 }
 0x2f7   :  { %v2095_v7 = vpop.f32.mrf.mxu0 }
 0x2f8   :  { %v1668_v7 = vld [vmem:[%s3231_s3 + $0x3f8] sm:$0xff] }
 0x303   :  { %v804_v8 = vpop.f32.mrf.mxu0 }
 0x304   :  { %v805_v22 = vadd.f32 %v804_v8, %v731_v6  ;;  %v1669_v6 = vld [vmem:[%s3231_s3 + $0x400] sm:$0xff]  ;;  %v1667_v8 = vld [vmem:[%s3231_s3 + $0x3f0] sm:$0xff] }
 0x305   :  { %v2112_v11 = vpop.f32.mrf.mxu0 }
 0x306   :  { %v1666_v11 = vld [vmem:[%s3231_s3 + $0x3e8] sm:$0xff] }
 0x311   :  { %v877_v14 = vpop.f32.mrf.mxu0 }
 0x312   :  { %v881_v23 = vadd.f32 %v877_v14, %v805_v22  ;;  %v1760_v14 = vld [vmem:[%s3231_s3 + $0x468] sm:$0xff] }
 0x313   :  { %v2129_v15 = vpop.f32.mrf.mxu0  ;;  %2284 = vmatpush3.msra.mxu1 %v1760_v14 }
 0x314   :  { %v1759_v15 = vld [vmem:[%s3231_s3 + $0x460] sm:$0xff]  ;;  %2285 = vmatprep.subr.mxu1 %v2315_v0 }
 0x315   :  { %2286 = vmatpush3.msra.mxu1 %v1759_v15 }
 0x316   :  { %2287 = vmatprep.subr.mxu1 %v2315_v0 }
 0x31f   :  { %v951_v16 = vpop.f32.mrf.mxu0 }
 0x320   :  { %v955_v24 = vadd.f32 %v951_v16, %v881_v23  ;;  %v1758_v16 = vld [vmem:[%s3231_s3 + $0x458] sm:$0xff] }
 0x321   :  { %v2146_v17 = vpop.f32.mrf.mxu0  ;;  %2288 = vmatpush3.msra.mxu1 %v1758_v16 }
 0x322   :  { %v1757_v17 = vld [vmem:[%s3231_s3 + $0x450] sm:$0xff]  ;;  %2289 = vmatprep.subr.mxu1 %v2315_v0 }
 0x323   :  { %2290 = vmatpush3.msra.mxu1 %v1757_v17 }
 0x324   :  { %2291 = vmatprep.subr.mxu1 %v2315_v0 }
 0x32d   :  { %v1025_v18 = vpop.f32.mrf.mxu0 }
 0x32e   :  { %v1029_v25 = vadd.f32 %v1025_v18, %v955_v24  ;;  %v1756_v18 = vld [vmem:[%s3231_s3 + $0x448] sm:$0xff] }
 0x32f   :  { %v2163_v19 = vpop.f32.mrf.mxu0  ;;  %2292 = vmatpush3.msra.mxu1 %v1756_v18 }
 0x330   :  { %v1755_v19 = vld [vmem:[%s3231_s3 + $0x440] sm:$0xff]  ;;  %2293 = vmatprep.subr.mxu1 %v2315_v0 }
 0x331   :  { %2294 = vmatpush3.msra.mxu1 %v1755_v19 }
 0x332   :  { %2295 = vmatprep.subr.mxu1 %v2315_v0 }
 0x33b   :  { %v1099_v20 = vpop.f32.mrf.mxu0 }
 0x33c   :  { %v1103_v57 = vadd.f32 %v1099_v20, %v1029_v25  ;;  %v1754_v20 = vld [vmem:[%s3231_s3 + $0x438] sm:$0xff] }
 0x33d   :  { %v2180_v21 = vpop.f32.mrf.mxu0  ;;  %2296 = vmatpush3.msra.mxu1 %v1754_v20 }
 0x33e   :  { %v1753_v21 = vld [vmem:[%s3231_s3 + $0x430] sm:$0xff]  ;;  %2297 = vmatprep.subr.mxu1 %v2315_v0 }
 0x33f   :  { %2298 = vmatpush3.msra.mxu1 %v1753_v21 }
 0x349   :  { %v1173_v9 = vpop.f32.mrf.mxu0 }
 0x34a   :  { %v1177_v26 = vadd.f32 %v1173_v9, %v1103_v57  ;;  %v1926_v9 = vld [vmem:[%s3231_s3 + $0x3e0] ss:$0 sm:$0xff] }
 0x34b   :  { %v2197_v27 = vpop.f32.mrf.mxu0 }
 0x34c   :  { %v1183_v28 = vadd.f32 %v1916_v10, %v1177_v26 }
 0x34e   :  { %v3027_v29 = vmax.f32 %v1183_v28, 0.0 }
 0x350   :  { %1855 = vrot.lane.b32.xlu1 %v3027_v29, %s2317_s6  ;;  %2207 = vmatmul.mubr.msk.f32.vlgmr.msra.gmra.mxu0 %vm115_vm2, %v3027_v29  ;;  %s2318_s6 = smov 96  }
 0x351   :  { %2210 = vmatpush3.msra.mxu0 %v1188_v31  ;;  %2217 = vmatprep.mubr.msk.f32.mxu0 %vm2316_vm0, %v2315_v0 }
 0x352   :  { %2211 = vmatprep.subr.mxu0 %v2315_v0 }
 0x353   :  { %2212 = vmatpush3.msra.mxu0 %v1187_v34 }
 0x354   :  { %2213 = vmatprep.subr.mxu0 %v2315_v0 }
 0x355   :  { %2214 = vmatpush3.msra.mxu0 %v1186_v59  ;;  %v1929_v59 = vld [vmem:[%s3231_s3 + $0x470] ss:$0 sm:$0xff] }
 0x356   :  { %2215 = vmatprep.subr.mxu0 %v2315_v0 }
 0x357   :  { %2216 = vmatpush3.msra.mxu0 %v1185_v12 }
 0x358   :  { %2218 = vmatmul.mubr.msk.f32.vlgmr.msra.gmra.mxu0 %vm115_vm2, %v3052_v13  ;;  %2220 = vmatprep.subr.mxu0 %v2315_v0 }
 0x359   :  { %2228 = vmatprep.mubr.msk.f32.mxu0 %vm2316_vm0, %v2315_v0  ;;  %2221 = vmatpush3.msra.mxu0 %v1349_v44 }
 0x35a   :  { %2222 = vmatprep.subr.mxu0 %v2315_v0 }
 0x35b   :  { %2223 = vmatpush3.msra.mxu0 %v1348_v30 }
 0x35c   :  { %2224 = vmatprep.subr.mxu0 %v2315_v0 }
 0x35d   :  { %2225 = vmatpush3.msra.mxu0 %v1347_v36 }
 0x35e   :  { %2226 = vmatprep.subr.mxu0 %v2315_v0 }
 0x35f   :  { %2227 = vmatpush3.msra.mxu0 %v1346_v37 }
 0x360   :  { %2231 = vmatprep.subr.mxu0 %v2315_v0 }
 0x410   :  { %v1262_v38 = vpop.f32.mrf.mxu0 }
 0x412   :  { %v2208_v39 = vpop.f32.mrf.mxu0 }
 0x418   :  { %v1335_v40 = vpop.f32.mrf.mxu0 }
 0x419   :  { %v1336_v42 = vadd.f32 %v1335_v40, %v1262_v38 }
 0x41a   :  { %v2219_v43 = vpop.f32.mrf.mxu0 }
 0x41b   :  { %v1344_v33 = vadd.f32 %v1919_v41, %v1336_v42  ;;  %v1922_v43 = vld [vmem:[%s3231_s3 + $0x398] ss:$0 sm:$0xff] }
 0x41d   :  { %2307 = vtanh.f32 %v1344_v33 }
 0x42a   :  { %v2308_v45 = vpop.eup %2307 }
 0x42b   :  { %2229 = vmatmul.mubr.msk.f32.vlgmr.msra.gmra.mxu0 %vm115_vm2, %v2308_v45 }
 0x42c   :  { %2239 = vmatprep.mubr.msk.f32.mxu0 %vm2316_vm0, %v2315_v0  ;;  %2232 = vmatpush3.msra.mxu0 %v1432_v46 }
 0x42d   :  { %2233 = vmatprep.subr.mxu0 %v2315_v0 }
 0x42e   :  { %2234 = vmatpush3.msra.mxu0 %v1431_v47 }
 0x42f   :  { %2235 = vmatprep.subr.mxu0 %v2315_v0 }
 0x430   :  { %2236 = vmatpush3.msra.mxu0 %v1430_v48 }
 0x431   :  { %2237 = vmatprep.subr.mxu0 %v2315_v0 }
 0x432   :  { %2238 = vmatpush3.msra.mxu0 %v1429_v49 }
 0x433   :  { %2242 = vmatprep.subr.mxu0 %v2315_v0 }
 0x4eb   :  { %v1424_v51 = vpop.f32.mrf.mxu0 }
 0x4ec   :  { %v1425_v52 = vadd.f32 %v1920_v50, %v1424_v51  ;;  %v1856_v50 = vpop.permute.xlu1 %1855 }
 0x4ed   :  { %v2230_v53 = vpop.f32.mrf.mxu0  ;;  %v1866_v51 = vsel %vm115_vm2, %v3052_v13, %v1856_v50 }
 0x4ee   :  { %2309 = vtanh.f32 %v1425_v52 }
 0x4fb   :  { %v2310_v55 = vpop.eup %2309 }
 0x4fc   :  { %2240 = vmatmul.mubr.msk.f32.vlgmr.msra.gmra.mxu0 %vm115_vm2, %v2310_v55 }
 0x4fd   :  { %2243 = vmatpush3.msra.mxu0 %v1518_v54  ;;  %2250 = vmatprep.mubr.msk.f32.mxu0 %vm2316_vm0, %v2315_v0 }
 0x4fe   :  { %2244 = vmatprep.subr.mxu0 %v2315_v0 }
 0x4ff   :  { %2245 = vmatpush3.msra.mxu0 %v1517_v56 }
 0x500   :  { %2246 = vmatprep.subr.mxu0 %v2315_v0 }
 0x501   :  { %2247 = vmatpush3.msra.mxu0 %v1516_v58 }
 0x502   :  { %2248 = vmatprep.subr.mxu0 %v2315_v0 }
 0x503   :  { %2249 = vmatpush3.msra.mxu0 %v1515_v60 }
 0x504   :  { %2251 = vmatmul.mubr.msk.f32.vlgmr.msra.gmra.mxu0 %vm115_vm2, %v3027_v29  ;;  %2253 = vmatprep.subr.mxu0 %v2315_v0 }
 0x505   :  { %2254 = vmatpush3.msra.mxu0 %v1514_v61  ;;  %2261 = vmatprep.mubr.msk.f32.mxu0 %vm2316_vm0, %v2315_v0 }
 0x506   :  { %2255 = vmatprep.subr.mxu0 %v2315_v0 }
 0x507   :  { %2256 = vmatpush3.msra.mxu0 %v1513_v62 }
 0x508   :  { %2257 = vmatprep.subr.mxu0 %v2315_v0 }
 0x509   :  { %2258 = vmatpush3.msra.mxu0 %v1512_v63 }
 0x50a   :  { %2259 = vmatprep.subr.mxu0 %v2315_v0 }
 0x50b   :  { %2260 = vmatpush3.msra.mxu0 %v1511_v1 }
 0x50c   :  { %2262 = vmatmul.mubr.msk.f32.vlgmr.msra.gmra.mxu0 %vm115_vm2, %v3052_v13  ;;  %2264 = vmatprep.subr.mxu0 %v2315_v0 }
 0x50d   :  { %2280 = vmatprep.mubr.msk.f32.mxu0 %vm2316_vm0, %v2315_v0  ;;  %2265 = vmatpush3.msra.mxu0 %v1673_v2 }
 0x50e   :  { %2266 = vmatprep.subr.mxu0 %v2315_v0 }
 0x50f   :  { %2267 = vmatpush3.msra.mxu0 %v1672_v3 }
 0x510   :  { %2268 = vmatprep.subr.mxu0 %v2315_v0 }
 0x511   :  { %2269 = vmatpush3.msra.mxu0 %v1671_v4 }
 0x512   :  { %2270 = vmatprep.subr.mxu0 %v2315_v0 }
 0x513   :  { %2271 = vmatpush3.msra.mxu0 %v1670_v5 }
 0x514   :  { %2272 = vmatprep.subr.mxu0 %v2315_v0 }
 0x515   :  { %2273 = vmatpush3.msra.mxu0 %v1669_v6 }
 0x516   :  { %2274 = vmatprep.subr.mxu0 %v2315_v0 }
 0x517   :  { %2275 = vmatpush3.msra.mxu0 %v1668_v7 }
 0x518   :  { %2276 = vmatprep.subr.mxu0 %v2315_v0 }
 0x519   :  { %2277 = vmatpush3.msra.mxu0 %v1667_v8 }
 0x51a   :  { %2278 = vmatprep.subr.mxu0 %v2315_v0  ;;  %v1927_v0 = vld [vmem:[%s3231_s3 + $0x428] ss:$0 sm:$0xff] }
 0x51b   :  { %2279 = vmatpush3.msra.mxu0 %v1666_v11 }
 0x5bc   :  { %v1507_v22 = vpop.f32.mrf.mxu0 }
 0x5bd   :  { %v1508_v33 = vadd.f32 %v1922_v43, %v1507_v22 }
 0x5be   :  { %v2241_v23 = vpop.f32.mrf.mxu0 }
 0x5c4   :  { %v1585_v24 = vpop.f32.mrf.mxu0 }
 0x5c6   :  { %v2252_v25 = vpop.f32.mrf.mxu0 }
 0x5cc   :  { %v1655_v57 = vpop.f32.mrf.mxu0 }
 0x5cd   :  { %v1656_v10 = vadd.f32 %v1655_v57, %v1585_v24 }
 0x5ce   :  { %v2263_v26 = vpop.f32.mrf.mxu0 }
 0x5cf   :  { %v1664_v27 = vadd.f32 %v1926_v9, %v1656_v10 }
 0x5d1   :  { %v1665_v28 = vmax.f32 %v1664_v27, 0.0 }
 0x5d3   :  { %2281 = vmatmul.mubr.msk.f32.vlgmr.msra.gmra.mxu0 %vm31_vm1, %v1665_v28 }
 0x693   :  { %v1748_v29 = vpop.f32.mrf.mxu0 }
 0x694   :  { %v1749_v31 = vadd.f32 %v1927_v0, %v1748_v29 }
 0x695   :  { %v2282_v32 = vpop.f32.mrf.mxu0 }
 0x696   :  { %v1752_v34 = vmax.f32 %v1749_v31, 0.0 }
 0x698   :  { %2300 = vmatmul.mubr.msk.f32.vlgmr.msra.gmra.mxu1 %vm31_vm1, %v1752_v34 }
 0x758   :  { %v1835_v12 = vpop.f32.mrf.mxu1 }
 0x759   :  { %v1836_v44 = vadd.f32 %v1929_v59, %v1835_v12 }
 0x75a   :  { %v2301_v30 = vpop.f32.mrf.mxu1 }
 0x75b   :  { %v1841_v36 = vsel %vm1840_vm6, %v1836_v44, -1e+30 }
 0x75c   :  { %v1842_v37 = vsel %vm115_vm2, %v1841_v36, -inf }
 0x75d   :  { %1843 = vmax.xlane.f32.xlu0 %v1842_v37 }
 0x7e6   :  { %v1844_v38 = vpop.xlane.xlu0 %1843 }
 0x7e7   :  { %v1845_v39 = vsub.f32 %v1841_v36, %v1844_v38 }
 0x7e9   :  { %v1846_v40 = vmul.f32 1.442695, %v1845_v39 }
 0x7eb   :  { %2311 = vpow2.f32 %v1846_v40 }
 0x7f8   :  { %v2312_v41 = vpop.eup %2311 }
 0x7f9   :  { %v1848_v42 = vsel %vm115_vm2, %v2312_v41, 0.0 }
 0x7fa   :  { %1849 = vadd.xlane.f32.xlu0 %v1848_v42 }
 0x810   :  { %1863 = vrot.lane.b32.xlu0 %v1508_v33, %s2318_s6 }
 0x883   :  { %v1850_v45 = vpop.xlane.xlu0 %1849 }
 0x884   :  { %2313 = vlog2.f32 %v1850_v45 }
 0x887   :  { %v1864_v53 = vpop.permute.xlu0 %1863 }
 0x891   :  { %v2314_v46 = vpop.eup %2313 }
 0x892   :  { %v1852_v47 = vmul.f32 0.6931472, %v2314_v46 }
 0x894   :  { %v1853_v48 = vadd.f32 %v1852_v47, %v1844_v38 }
 0x896   :  { %v1854_v49 = vsub.f32 %v1841_v36, %v1853_v48 }
 0x898   :  { %1859 = vrot.lane.b32.xlu1 %v1854_v49, %s2319_s7 }
 0x90a   :  { %v1860_v52 = vpop.permute.xlu1 %1859 }
 0x90b   :  { %v1867_v54 = vsel %vm31_vm1, %v1866_v51, %v1860_v52 }
 0x90c   :  { %v1869_v55 = vsel %vm1868_vm7, %v1867_v54, %v1864_v53 }
 0x90d   :  { %1870 = vst [vmem:[%s3235_s4] sm:$0xff] %v1869_v55 }

</bundles_post_ra>
